<compile_context>
chip_gen: v6e
topology: v6e:2x2x1
jax: 0.10.0
libtpu: 0.0.40
codegen_flags: <defaults>
</compile_context>

<pallas_src>
import functools

import jax
import jax.numpy as jnp
from jax.experimental import pallas as pl
from jax.experimental.pallas import tpu as pltpu


def _vmem_limit_bytes():
    """<= 64 MiB and <= 0.75 * physical VMEM (v7x has only 64 MiB physical)."""
    cap = 128 * 1024 * 1024
    try:
        cap = getattr(pltpu.get_tpu_info(), "vmem_capacity_bytes", cap)
    except Exception:  # e.g. interpret mode / no TPU introspection
        pass
    return min(64 * 1024 * 1024, int(cap) * 3 // 4)


_VMEM_LIMIT = _vmem_limit_bytes()


def _cparams(*sem):
    return pltpu.CompilerParams(
        dimension_semantics=sem, vmem_limit_bytes=_VMEM_LIMIT)


def _round_up(x, m):
    return (x + m - 1) // m * m


def _choose_tile(n, target=512):
    """Single (pad-to-8) tile if N <= target, else a multiple-of-128 tile of size target."""
    if n <= target:
        return _round_up(n, 8)
    return max(128, (target // 128) * 128)


def _affine(x, w_ref, b_ref, relu):
    """maybe_relu(x @ w + b): bf16 MXU operands, f32 accumulate + f32 epilogue."""
    y = jnp.dot(x.astype(jnp.bfloat16), w_ref[...],
                preferred_element_type=jnp.float32)
    y = y + b_ref[...]
    if relu:
        y = jnp.maximum(y, 0.0)
    return y


# ---------------------------------------------------------------------------
# Kernels
# ---------------------------------------------------------------------------

def _stn_conv_max_kernel(x_ref, w1_ref, b1_ref, w2_ref, b2_ref, w3_ref, b3_ref,
                         g_ref, gmax, *, n_valid, padded):
    """Fused STN conv chain c1->c2->c3 (ReLU) + running max over the N-tile axis."""
    n = pl.program_id(1)

    @pl.when(n == 0)
    def _init():
        gmax[...] = jnp.full(gmax.shape, -jnp.inf, dtype=gmax.dtype)

    h = _affine(x_ref[...], w1_ref, b1_ref, relu=True)
    h = _affine(h, w2_ref, b2_ref, relu=True)
    h = _affine(h, w3_ref, b3_ref, relu=True)
    if padded:  # mask padded rows out of the max (static Python branch)
        tn = x_ref.shape[0]
        row = jax.lax.broadcasted_iota(jnp.int32, (tn, 1), 0) + n * tn
        h = jnp.where(row < n_valid, h, -jnp.inf)
    gmax[...] = jnp.maximum(gmax[...], jnp.max(h, axis=0, keepdims=True))

    @pl.when(n == pl.num_programs(1) - 1)
    def _done():
        g_ref[...] = gmax[...].astype(g_ref.dtype)


def _stn_head_kernel(g_ref, w1_ref, b1_ref, w2_ref, b2_ref, w3_ref, b3_ref,
                     eye_ref, t_ref):
    """Fused STN FC head f1->f2->f3 + identity add, batched over B (M = B)."""
    t = _affine(g_ref[...], w1_ref, b1_ref, relu=True)
    t = _affine(t, w2_ref, b2_ref, relu=True)
    t = _affine(t, w3_ref, b3_ref, relu=False)
    t_ref[...] = (t + eye_ref[...]).astype(t_ref.dtype)


def _transformed_conv1_kernel(x_ref, wf_ref, b_ref, o_ref):
    """Input transform folded into conv1: relu(x @ (trans @ W1) + b1); fold precomputed."""
    y = jnp.dot(x_ref[...].astype(jnp.bfloat16), wf_ref[...],
                preferred_element_type=jnp.float32) + b_ref[...]
    o_ref[...] = jnp.maximum(y, 0.0).astype(o_ref.dtype)


def _feat_chain_max_kernel(h1_ref, w2f_ref, b2_ref, w3_ref, b3_ref,
                           g_ref, gmax, *, n_valid, padded):
    """conv2 -> conv3 -> maxpool fused; feature-transform fold (tf@W2) precomputed."""
    n = pl.program_id(1)

    @pl.when(n == 0)
    def _init():
        gmax[...] = jnp.full(gmax.shape, -jnp.inf, dtype=gmax.dtype)

    h2 = jnp.dot(h1_ref[...], w2f_ref[...],
                 preferred_element_type=jnp.float32) + b2_ref[...]
    h2 = jnp.maximum(h2, 0.0)
    h3 = jnp.dot(h2.astype(jnp.bfloat16), w3_ref[...],
                 preferred_element_type=jnp.float32) + b3_ref[...]
    if padded:
        tn = h1_ref.shape[0]
        row = jax.lax.broadcasted_iota(jnp.int32, (tn, 1), 0) + n * tn
        h3 = jnp.where(row < n_valid, h3, -jnp.inf)
    gmax[...] = jnp.maximum(gmax[...], jnp.max(h3, axis=0, keepdims=True))

    @pl.when(n == pl.num_programs(1) - 1)
    def _done():
        g_ref[...] = gmax[...].astype(g_ref.dtype)


def _regressor_kernel(h1_ref, wpff_ref, gpart_ref, w2_ref, b2_ref, w3_ref, b3_ref,
                      w4_ref, b4_ref, o_ref):
    """rconv1..rconv4 fused. rconv1 = relu(pointfeat @ (tf@Wpf) + (g @ Wg + b)); both the
    weight fold and the global part are precomputed per batch. Output is stored lane-dense
    as (out_dim, tn)."""
    r = jnp.dot(h1_ref[...], wpff_ref[...],
                preferred_element_type=jnp.float32) + gpart_ref[...]
    r = jnp.maximum(r, 0.0)
    r = jnp.maximum(jnp.dot(r.astype(jnp.bfloat16), w2_ref[...],
                            preferred_element_type=jnp.float32) + b2_ref[...], 0.0)
    r = jnp.maximum(jnp.dot(r.astype(jnp.bfloat16), w3_ref[...],
                            preferred_element_type=jnp.float32) + b3_ref[...], 0.0)
    out = jnp.dot(r.astype(jnp.bfloat16), w4_ref[...],
                  preferred_element_type=jnp.float32) + b4_ref[...]
    # Lane-dense store: transpose the small (tn, out_dim) result to (out_dim, tn).
    o_ref[...] = out.T.astype(o_ref.dtype)


# ---------------------------------------------------------------------------
# pallas_call wrappers
# ---------------------------------------------------------------------------

def stn_conv_max(x, stn_params, tn, n_valid, padded):
    B, Np, Cin = x.shape
    (w1, b1), (w2, b2), (w3, b3) = stn_params["c1"], stn_params["c2"], stn_params["c3"]
    C3 = w3.shape[1]
    nt = Np // tn
    kernel = functools.partial(_stn_conv_max_kernel, n_valid=n_valid, padded=padded)
    return pl.pallas_call(
        kernel,
        out_shape=jax.ShapeDtypeStruct((B, 1, C3), jnp.float32),
        grid=(B, nt),
        in_specs=[
            pl.BlockSpec((None, tn, Cin), lambda bi, n: (bi, n, 0)),
            pl.BlockSpec(w1.shape, lambda bi, n: (0, 0)),
            pl.BlockSpec(b1.shape, lambda bi, n: (0, 0)),
            pl.BlockSpec(w2.shape, lambda bi, n: (0, 0)),
            pl.BlockSpec(b2.shape, lambda bi, n: (0, 0)),
            pl.BlockSpec(w3.shape, lambda bi, n: (0, 0)),
            pl.BlockSpec(b3.shape, lambda bi, n: (0, 0)),
        ],
        out_specs=pl.BlockSpec((None, 1, C3), lambda bi, n: (bi, 0, 0)),
        scratch_shapes=[pltpu.VMEM((1, C3), jnp.float32)],
        compiler_params=_cparams("parallel", "arbitrary"),
    )(x, w1, b1, w2, b2, w3, b3)


def stn_head(g2d, stn_params, k):
    """g2d: (B, C3) -> (B, k, k). Single launch; M = B (not B launches of M=1)."""
    B, C3 = g2d.shape
    (w1, b1), (w2, b2), (w3, b3) = stn_params["f1"], stn_params["f2"], stn_params["f3"]
    eye = jnp.eye(k, dtype=jnp.float32).reshape(1, k * k)
    t = pl.pallas_call(
        _stn_head_kernel,
        out_shape=jax.ShapeDtypeStruct((B, k * k), jnp.float32),
        grid=(1,),
        in_specs=[
            pl.BlockSpec((B, C3), lambda i: (0, 0)),
            pl.BlockSpec(w1.shape, lambda i: (0, 0)),
            pl.BlockSpec(b1.shape, lambda i: (0, 0)),
            pl.BlockSpec(w2.shape, lambda i: (0, 0)),
            pl.BlockSpec(b2.shape, lambda i: (0, 0)),
            pl.BlockSpec(w3.shape, lambda i: (0, 0)),
            pl.BlockSpec(b3.shape, lambda i: (0, 0)),
            pl.BlockSpec((1, k * k), lambda i: (0, 0)),
        ],
        out_specs=pl.BlockSpec((B, k * k), lambda i: (0, 0)),
        compiler_params=_cparams("arbitrary"),
    )(g2d, w1, b1, w2, b2, w3, b3, eye)
    return t.reshape(B, k, k)


def transformed_conv1(x, wf, b1, tn):
    B, Np, D = x.shape
    Fch = wf.shape[-1]
    nt = Np // tn
    return pl.pallas_call(
        _transformed_conv1_kernel,
        out_shape=jax.ShapeDtypeStruct((B, Np, Fch), jnp.bfloat16),
        grid=(B, nt),
        in_specs=[
            pl.BlockSpec((None, tn, D), lambda bi, n: (bi, n, 0)),
            pl.BlockSpec((None, D, Fch), lambda bi, n: (bi, 0, 0)),
            pl.BlockSpec(b1.shape, lambda bi, n: (0, 0)),
        ],
        out_specs=pl.BlockSpec((None, tn, Fch), lambda bi, n: (bi, n, 0)),
        compiler_params=_cparams("parallel", "parallel"),
    )(x, wf, b1)


def feat_chain_max(h1, w2f, b2, conv3, tn, n_valid, padded):
    B, Np, Fch = h1.shape
    C2 = w2f.shape[-1]
    w3, b3 = conv3
    C16 = w3.shape[1]
    nt = Np // tn
    kernel = functools.partial(_feat_chain_max_kernel, n_valid=n_valid, padded=padded)
    return pl.pallas_call(
        kernel,
        out_shape=jax.ShapeDtypeStruct((B, 1, C16), jnp.float32),
        grid=(B, nt),
        in_specs=[
            pl.BlockSpec((None, tn, Fch), lambda bi, n: (bi, n, 0)),
            pl.BlockSpec((None, Fch, C2), lambda bi, n: (bi, 0, 0)),
            pl.BlockSpec(b2.shape, lambda bi, n: (0, 0)),
            pl.BlockSpec(w3.shape, lambda bi, n: (0, 0)),
            pl.BlockSpec(b3.shape, lambda bi, n: (0, 0)),
        ],
        out_specs=pl.BlockSpec((None, 1, C16), lambda bi, n: (bi, 0, 0)),
        scratch_shapes=[pltpu.VMEM((1, C16), jnp.float32)],
        compiler_params=_cparams("parallel", "arbitrary"),
    )(h1, w2f, b2, w3, b3)


def regressor(h1, wpff, gpart, reg, tn):
    B, Np, Fch = h1.shape
    C8 = wpff.shape[-1]
    w2, b2 = reg["c2"]
    w3, b3 = reg["c3"]
    w4, b4 = reg["c4"]
    out_dim = w4.shape[1]
    nt = Np // tn
    return pl.pallas_call(
        _regressor_kernel,
        out_shape=jax.ShapeDtypeStruct((B, out_dim, Np), jnp.float32),
        grid=(B, nt),
        in_specs=[
            pl.BlockSpec((None, tn, Fch), lambda bi, n: (bi, n, 0)),
            pl.BlockSpec((None, Fch, C8), lambda bi, n: (bi, 0, 0)),
            pl.BlockSpec((None, 1, C8), lambda bi, n: (bi, 0, 0)),
            pl.BlockSpec(w2.shape, lambda bi, n: (0, 0)),
            pl.BlockSpec(b2.shape, lambda bi, n: (0, 0)),
            pl.BlockSpec(w3.shape, lambda bi, n: (0, 0)),
            pl.BlockSpec(b3.shape, lambda bi, n: (0, 0)),
            pl.BlockSpec(w4.shape, lambda bi, n: (0, 0)),
            pl.BlockSpec(b4.shape, lambda bi, n: (0, 0)),
        ],
        out_specs=pl.BlockSpec((None, out_dim, tn), lambda bi, n: (bi, 0, n)),
        compiler_params=_cparams("parallel", "parallel"),
    )(h1, wpff, gpart, w2, b2, w3, b3, w4, b4)


# ---------------------------------------------------------------------------
# Parameter construction (deterministic, synthetic; BN folded; bf16 weights, f32 biases)
# ---------------------------------------------------------------------------

class KeyGen:
    def __init__(self, key):
        self.key = key

    def __call__(self):
        self.key, k = jax.random.split(self.key)
        return k


def _fold_conv_bn(w, b, gamma, beta, mean, var, eps=1e-5):
    scale = gamma / jnp.sqrt(var + eps)
    w_f = (w * scale[:, None]).T                # (Cin, Cout)
    b_f = ((b - mean) * scale + beta)[None, :]  # (1, Cout)
    return w_f.astype(jnp.bfloat16), b_f.astype(jnp.float32)


def _plain(w, b):
    return w.T.astype(jnp.bfloat16), b[None, :].astype(jnp.float32)


def _init_layer(kg, cout, cin, with_bn):
    w = 0.2 * jax.random.normal(kg(), (cout, cin), jnp.float32)
    b = 0.1 * jax.random.normal(kg(), (cout,), jnp.float32)
    if with_bn:
        gamma = 1.0 + 0.1 * jax.random.normal(kg(), (cout,), jnp.float32)
        beta = 0.1 * jax.random.normal(kg(), (cout,), jnp.float32)
        mean = 0.1 * jax.random.normal(kg(), (cout,), jnp.float32)
        var = 1.0 + 0.1 * jnp.abs(jax.random.normal(kg(), (cout,), jnp.float32))
        return _fold_conv_bn(w, b, gamma, beta, mean, var)
    return _plain(w, b)


def init_stn(kg, k, scaling):
    f64 = int(64 * scaling)
    f128 = int(128 * scaling)
    f1024 = int(1024 * scaling)
    f512 = int(512 * scaling)
    f256 = int(256 * scaling)
    return {
        "c1": _init_layer(kg, f64, k, True),
        "c2": _init_layer(kg, f128, f64, True),
        "c3": _init_layer(kg, f1024, f128, True),
        "f1": _init_layer(kg, f512, f1024, True),
        "f2": _init_layer(kg, f256, f512, True),
        "f3": _init_layer(kg, k * k, f256, False),
    }


def init_basic_pointnet(key, input_dim, output_dim, scaling=1.0):
    kg = KeyGen(key)
    F = int(64 * scaling)
    params = {
        # PointNetFeature
        "stn": init_stn(kg, input_dim, scaling),
        "conv1": _init_layer(kg, F, input_dim, True),
        "fstn": init_stn(kg, F, scaling),
        "conv2": _init_layer(kg, 2 * F, F, True),
        "conv3": _init_layer(kg, 16 * F, 2 * F, True),
    }
    # PointNetRegressor; rconv1 weight split into the global-feature / pointfeat halves
    # (cat([global(16F), pointfeat(F)]) @ W^T == g @ W[:16F] + pointfeat @ W[16F:]).
    w_r1, b_r1 = _init_layer(kg, 8 * F, 17 * F, True)   # (17F, 8F) bf16
    params["reg"] = {
        "c1_g": w_r1[: 16 * F],
        "c1_pf": w_r1[16 * F:],
        "c1_b": b_r1,
        "c2": _init_layer(kg, 4 * F, 8 * F, True),
        "c3": _init_layer(kg, 2 * F, 4 * F, True),
        "c4": _init_layer(kg, output_dim, 2 * F, False),
    }
    return params


# ---------------------------------------------------------------------------
# Forward pass
# ---------------------------------------------------------------------------

def basic_pointnet_forward(params, x, *, tile_n=512):
    """x: (B, N, input_dim) -> (output (B, N, output_dim), trans, trans_feat)."""
    B, N, D = x.shape
    tn = _choose_tile(N, tile_n)
    n_pad = _round_up(N, tn)
    padded = n_pad != N
    if padded:
        x = jnp.pad(x, ((0, 0), (0, n_pad - N), (0, 0)))

    # --- PointNetFeature (global_feat=False, input/feature transform, max_pool) ---
    g1 = stn_conv_max(x, params["stn"], tn, N, padded)            # (B, 1, 16F_stn)
    trans = stn_head(g1.reshape(B, -1), params["stn"], D)         # (B, D, D)

    # Per-batch weight folds (hoisted out of the per-tile kernels; tiny XLA einsums).
    w1, b1 = params["conv1"]
    wf = jnp.einsum("bij,jf->bif", trans,
                    w1.astype(jnp.float32)).astype(jnp.bfloat16)  # (B, D, F)
    h1 = transformed_conv1(x, wf, b1, tn)                         # (B, n_pad, F) bf16
    Fch = h1.shape[-1]

    g2 = stn_conv_max(h1, params["fstn"], tn, N, padded)
    trans_feat = stn_head(g2.reshape(B, -1), params["fstn"], Fch)  # (B, F, F)

    w2, b2 = params["conv2"]
    w2f = jnp.einsum("bij,jf->bif", trans_feat,
                     w2.astype(jnp.float32)).astype(jnp.bfloat16)  # (B, F, 2F)
    g = feat_chain_max(h1, w2f, b2, params["conv3"], tn, N, padded)  # (B, 1, 16F)

    # --- PointNetRegressor (concat never materialized; folds per-batch) ---
    reg = params["reg"]
    wpff = jnp.einsum("bij,jf->bif", trans_feat,
                      reg["c1_pf"].astype(jnp.float32)).astype(jnp.bfloat16)  # (B, F, 8F)
    gpart = jnp.einsum("bic,cf->bif", g,
                       reg["c1_g"].astype(jnp.float32)) + reg["c1_b"]         # (B, 1, 8F)

    out_t = regressor(h1, wpff, gpart, reg, tn)                    # (B, out_dim, n_pad)
    out = jnp.transpose(out_t[:, :, :N], (0, 2, 1))                # (B, N, out_dim)
    return out, trans, trans_feat


# ---------------------------------------------------------------------------

if __name__ == "__main__":
    B, N, INPUT_DIM, OUTPUT_DIM, SCALING = 2, 16, 4, 2, 0.25
    F = int(64 * SCALING)

    key = jax.random.PRNGKey(0)
    kp, kx = jax.random.split(key)
    params = init_basic_pointnet(kp, INPUT_DIM, OUTPUT_DIM, SCALING)
    x = jax.random.normal(kx, (B, N, INPUT_DIM), jnp.float32)

    fwd = jax.jit(basic_pointnet_forward)
    out, trans, trans_feat = fwd(params, x)
    jax.block_until_ready((out, trans, trans_feat))

    assert out.shape == (B, N, OUTPUT_DIM)
    assert trans.shape == (B, INPUT_DIM, INPUT_DIM)
    assert trans_feat.shape == (B, F, F)
    print("KERNEL_OK")
</pallas_src>

<mosaic_0001>
module attributes {stable_mosaic.version = 11 : i64} {
  func.func @_stn_conv_max_kernel(%arg0: i32, %arg1: i32, %arg2: memref<1x16x4xf32, #tpu.memory_space<vmem>>, %arg3: memref<4x16xbf16, #tpu.memory_space<vmem>>, %arg4: memref<1x16xf32, #tpu.memory_space<vmem>>, %arg5: memref<16x32xbf16, #tpu.memory_space<vmem>>, %arg6: memref<1x32xf32, #tpu.memory_space<vmem>>, %arg7: memref<32x256xbf16, #tpu.memory_space<vmem>>, %arg8: memref<1x256xf32, #tpu.memory_space<vmem>>, %arg9: memref<1x1x256xf32, #tpu.memory_space<vmem>>, %arg10: memref<1x256xf32, #tpu.memory_space<vmem>>) attributes {dimension_semantics = [#tpu.dimension_semantics<parallel>, #tpu.dimension_semantics<arbitrary>], iteration_bounds = array<i64: 2, 1>, scalar_prefetch = 0 : i64, scratch_operands = 1 : i64, tpu.core_type = #tpu.core_type<tc>, window_params = [{transform_indices = @transform_0, window_bounds = array<i64: 1, 16, 4>}, {pipeline_mode = #tpu.pipeline_mode<synchronous>, transform_indices = @transform_1, window_bounds = array<i64: 4, 16>}, {pipeline_mode = #tpu.pipeline_mode<synchronous>, transform_indices = @transform_2, window_bounds = array<i64: 1, 16>}, {pipeline_mode = #tpu.pipeline_mode<synchronous>, transform_indices = @transform_3, window_bounds = array<i64: 16, 32>}, {pipeline_mode = #tpu.pipeline_mode<synchronous>, transform_indices = @transform_4, window_bounds = array<i64: 1, 32>}, {pipeline_mode = #tpu.pipeline_mode<synchronous>, transform_indices = @transform_5, window_bounds = array<i64: 32, 256>}, {pipeline_mode = #tpu.pipeline_mode<synchronous>, transform_indices = @transform_6, window_bounds = array<i64: 1, 256>}, {transform_indices = @transform_7, window_bounds = array<i64: 1, 1, 256>}]} {
    %c0_i32 = arith.constant 0 : i32
    %0 = arith.cmpi eq, %arg1, %c0_i32 : i32
    %1 = arith.extui %0 : i1 to i32
    %c0_i32_0 = arith.constant 0 : i32
    %2 = arith.cmpi ne, %1, %c0_i32_0 : i32
    scf.if %2 {
      %cst_27 = arith.constant 0xFF800000 : f32
      %37 = vector.broadcast %cst_27 : f32 to vector<1x256xf32>
      %c0_28 = arith.constant 0 : index
      %c0_29 = arith.constant 0 : index
      %38 = vector.load %arg10[%c0_28, %c0_29] : memref<1x256xf32, #tpu.memory_space<vmem>>, vector<1x256xf32>
      tpu.vector_store %arg10[%c0_28, %c0_29], %37 {strides = array<i32>} : memref<1x256xf32, #tpu.memory_space<vmem>>, vector<1x256xf32>,
    } else {
    }
    %c0 = arith.constant 0 : index
    %c0_1 = arith.constant 0 : index
    %c0_2 = arith.constant 0 : index
    %3 = vector.load %arg2[%c0, %c0_1, %c0_2] : memref<1x16x4xf32, #tpu.memory_space<vmem>>, vector<1x16x4xf32>
    %4 = vector.shape_cast %3 : vector<1x16x4xf32> to vector<16x4xf32>
    %5 = arith.truncf %4 : vector<16x4xf32> to vector<16x4xbf16>
    %c0_3 = arith.constant 0 : index
    %c0_4 = arith.constant 0 : index
    %6 = vector.load %arg3[%c0_3, %c0_4] : memref<4x16xbf16, #tpu.memory_space<vmem>>, vector<4x16xbf16>
    %cst = arith.constant dense<0.000000e+00> : vector<16x16xf32>
    %7 = tpu.matmul %5, %6, %cst {dimension_numbers = #tpu.dot_dimension_numbers<[1], [0], [0], [1], [0, 0, 1, 1], [], []>} : vector<16x4xbf16>, vector<4x16xbf16>, vector<16x16xf32> -> vector<16x16xf32>
    %c0_5 = arith.constant 0 : index
    %c0_6 = arith.constant 0 : index
    %8 = vector.load %arg4[%c0_5, %c0_6] : memref<1x16xf32, #tpu.memory_space<vmem>>, vector<1x16xf32>
    %9 = vector.broadcast %8 : vector<1x16xf32> to vector<16x16xf32>
    %10 = arith.addf %7, %9 : vector<16x16xf32>
    %cst_7 = arith.constant 0.000000e+00 : f32
    %11 = vector.broadcast %cst_7 : f32 to vector<16x16xf32>
    %12 = arith.maximumf %10, %11 : vector<16x16xf32>
    %13 = arith.truncf %12 : vector<16x16xf32> to vector<16x16xbf16>
    %c0_8 = arith.constant 0 : index
    %c0_9 = arith.constant 0 : index
    %14 = vector.load %arg5[%c0_8, %c0_9] : memref<16x32xbf16, #tpu.memory_space<vmem>>, vector<16x32xbf16>
    %cst_10 = arith.constant dense<0.000000e+00> : vector<16x32xf32>
    %15 = tpu.matmul %13, %14, %cst_10 {dimension_numbers = #tpu.dot_dimension_numbers<[1], [0], [0], [1], [0, 0, 1, 1], [], []>} : vector<16x16xbf16>, vector<16x32xbf16>, vector<16x32xf32> -> vector<16x32xf32>
    %c0_11 = arith.constant 0 : index
    %c0_12 = arith.constant 0 : index
    %16 = vector.load %arg6[%c0_11, %c0_12] : memref<1x32xf32, #tpu.memory_space<vmem>>, vector<1x32xf32>
    %17 = vector.broadcast %16 : vector<1x32xf32> to vector<16x32xf32>
    %18 = arith.addf %15, %17 : vector<16x32xf32>
    %cst_13 = arith.constant 0.000000e+00 : f32
    %19 = vector.broadcast %cst_13 : f32 to vector<16x32xf32>
    %20 = arith.maximumf %18, %19 : vector<16x32xf32>
    %21 = arith.truncf %20 : vector<16x32xf32> to vector<16x32xbf16>
    %c0_14 = arith.constant 0 : index
    %c0_15 = arith.constant 0 : index
    %22 = vector.load %arg7[%c0_14, %c0_15] : memref<32x256xbf16, #tpu.memory_space<vmem>>, vector<32x256xbf16>
    %cst_16 = arith.constant dense<0.000000e+00> : vector<16x256xf32>
    %23 = tpu.matmul %21, %22, %cst_16 {dimension_numbers = #tpu.dot_dimension_numbers<[1], [0], [0], [1], [0, 0, 1, 1], [], []>} : vector<16x32xbf16>, vector<32x256xbf16>, vector<16x256xf32> -> vector<16x256xf32>
    %c0_17 = arith.constant 0 : index
    %c0_18 = arith.constant 0 : index
    %24 = vector.load %arg8[%c0_17, %c0_18] : memref<1x256xf32, #tpu.memory_space<vmem>>, vector<1x256xf32>
    %25 = vector.broadcast %24 : vector<1x256xf32> to vector<16x256xf32>
    %26 = arith.addf %23, %25 : vector<16x256xf32>
    %cst_19 = arith.constant 0.000000e+00 : f32
    %27 = vector.broadcast %cst_19 : f32 to vector<16x256xf32>
    %28 = arith.maximumf %26, %27 : vector<16x256xf32>
    %c0_20 = arith.constant 0 : index
    %c0_21 = arith.constant 0 : index
    %29 = vector.load %arg10[%c0_20, %c0_21] : memref<1x256xf32, #tpu.memory_space<vmem>>, vector<1x256xf32>
    %cst_22 = arith.constant dense<0xFF800000> : vector<256xf32>
    %30 = vector.multi_reduction <maximumf>, %28, %cst_22 [0] : vector<16x256xf32> to vector<256xf32>
    %31 = vector.shape_cast %30 : vector<256xf32> to vector<1x256xf32>
    %32 = arith.maximumf %29, %31 : vector<1x256xf32>
    %c0_23 = arith.constant 0 : index
    %c0_24 = arith.constant 0 : index
    %33 = vector.load %arg10[%c0_23, %c0_24] : memref<1x256xf32, #tpu.memory_space<vmem>>, vector<1x256xf32>
    tpu.vector_store %arg10[%c0_23, %c0_24], %32 {strides = array<i32>} : memref<1x256xf32, #tpu.memory_space<vmem>>, vector<1x256xf32>,
    %c0_i32_25 = arith.constant 0 : i32
    %34 = arith.cmpi eq, %arg1, %c0_i32_25 : i32
    %35 = arith.extui %34 : i1 to i32
    %c0_i32_26 = arith.constant 0 : i32
    %36 = arith.cmpi ne, %35, %c0_i32_26 : i32
    scf.if %36 {
      %c0_27 = arith.constant 0 : index
      %c0_28 = arith.constant 0 : index
      %37 = vector.load %arg10[%c0_27, %c0_28] : memref<1x256xf32, #tpu.memory_space<vmem>>, vector<1x256xf32>
      %c0_29 = arith.constant 0 : index
      %c0_30 = arith.constant 0 : index
      %c0_31 = arith.constant 0 : index
      %38 = vector.load %arg9[%c0_29, %c0_30, %c0_31] : memref<1x1x256xf32, #tpu.memory_space<vmem>>, vector<1x1x256xf32>
      %39 = vector.shape_cast %38 : vector<1x1x256xf32> to vector<1x256xf32>
      %40 = vector.shape_cast %37 : vector<1x256xf32> to vector<1x1x256xf32>
      tpu.vector_store %arg9[%c0_29, %c0_30, %c0_31], %40 {strides = array<i32>} : memref<1x1x256xf32, #tpu.memory_space<vmem>>, vector<1x1x256xf32>,
    } else {
    }
    return
  }
  func.func @transform_0(%arg0: i32, %arg1: i32) -> (i32, i32, i32) {
    %c0_i32 = arith.constant 0 : i32
    %c0_i32_0 = arith.constant 0 : i32
    return %arg0, %arg1, %c0_i32 : i32, i32, i32
  }
  func.func @transform_1(%arg0: i32, %arg1: i32) -> (i32, i32) {
    %c0_i32 = arith.constant 0 : i32
    %c0_i32_0 = arith.constant 0 : i32
    %c0_i32_1 = arith.constant 0 : i32
    return %c0_i32, %c0_i32_0 : i32, i32
  }
  func.func @transform_2(%arg0: i32, %arg1: i32) -> (i32, i32) {
    %c0_i32 = arith.constant 0 : i32
    %c0_i32_0 = arith.constant 0 : i32
    %c0_i32_1 = arith.constant 0 : i32
    return %c0_i32, %c0_i32_0 : i32, i32
  }
  func.func @transform_3(%arg0: i32, %arg1: i32) -> (i32, i32) {
    %c0_i32 = arith.constant 0 : i32
    %c0_i32_0 = arith.constant 0 : i32
    %c0_i32_1 = arith.constant 0 : i32
    return %c0_i32, %c0_i32_0 : i32, i32
  }
  func.func @transform_4(%arg0: i32, %arg1: i32) -> (i32, i32) {
    %c0_i32 = arith.constant 0 : i32
    %c0_i32_0 = arith.constant 0 : i32
    %c0_i32_1 = arith.constant 0 : i32
    return %c0_i32, %c0_i32_0 : i32, i32
  }
  func.func @transform_5(%arg0: i32, %arg1: i32) -> (i32, i32) {
    %c0_i32 = arith.constant 0 : i32
    %c0_i32_0 = arith.constant 0 : i32
    %c0_i32_1 = arith.constant 0 : i32
    return %c0_i32, %c0_i32_0 : i32, i32
  }
  func.func @transform_6(%arg0: i32, %arg1: i32) -> (i32, i32) {
    %c0_i32 = arith.constant 0 : i32
    %c0_i32_0 = arith.constant 0 : i32
    %c0_i32_1 = arith.constant 0 : i32
    return %c0_i32, %c0_i32_0 : i32, i32
  }
  func.func @transform_7(%arg0: i32, %arg1: i32) -> (i32, i32, i32) {
    %c0_i32 = arith.constant 0 : i32
    %c0_i32_0 = arith.constant 0 : i32
    %c0_i32_1 = arith.constant 0 : i32
    return %arg0, %c0_i32, %c0_i32_0 : i32, i32, i32
  }
}

module attributes {stable_mosaic.version = 11 : i64} {
  func.func @_transformed_conv1_kernel(%arg0: i32, %arg1: i32, %arg2: memref<1x16x4xf32, #tpu.memory_space<vmem>>, %arg3: memref<1x4x16xbf16, #tpu.memory_space<vmem>>, %arg4: memref<1x16xf32, #tpu.memory_space<vmem>>, %arg5: memref<1x16x16xbf16, #tpu.memory_space<vmem>>) attributes {dimension_semantics = [#tpu.dimension_semantics<parallel>, #tpu.dimension_semantics<parallel>], iteration_bounds = array<i64: 2, 1>, scalar_prefetch = 0 : i64, scratch_operands = 0 : i64, tpu.core_type = #tpu.core_type<tc>, window_params = [{transform_indices = @transform_0, window_bounds = array<i64: 1, 16, 4>}, {transform_indices = @transform_1, window_bounds = array<i64: 1, 4, 16>}, {pipeline_mode = #tpu.pipeline_mode<synchronous>, transform_indices = @transform_2, window_bounds = array<i64: 1, 16>}, {transform_indices = @transform_3, window_bounds = array<i64: 1, 16, 16>}]} {
    %c0 = arith.constant 0 : index
    %c0_0 = arith.constant 0 : index
    %c0_1 = arith.constant 0 : index
    %0 = vector.load %arg2[%c0, %c0_0, %c0_1] : memref<1x16x4xf32, #tpu.memory_space<vmem>>, vector<1x16x4xf32>
    %1 = vector.shape_cast %0 : vector<1x16x4xf32> to vector<16x4xf32>
    %2 = arith.truncf %1 : vector<16x4xf32> to vector<16x4xbf16>
    %c0_2 = arith.constant 0 : index
    %c0_3 = arith.constant 0 : index
    %c0_4 = arith.constant 0 : index
    %3 = vector.load %arg3[%c0_2, %c0_3, %c0_4] : memref<1x4x16xbf16, #tpu.memory_space<vmem>>, vector<1x4x16xbf16>
    %4 = vector.shape_cast %3 : vector<1x4x16xbf16> to vector<4x16xbf16>
    %cst = arith.constant dense<0.000000e+00> : vector<16x16xf32>
    %5 = tpu.matmul %2, %4, %cst {dimension_numbers = #tpu.dot_dimension_numbers<[1], [0], [0], [1], [0, 0, 1, 1], [], []>} : vector<16x4xbf16>, vector<4x16xbf16>, vector<16x16xf32> -> vector<16x16xf32>
    %c0_5 = arith.constant 0 : index
    %c0_6 = arith.constant 0 : index
    %6 = vector.load %arg4[%c0_5, %c0_6] : memref<1x16xf32, #tpu.memory_space<vmem>>, vector<1x16xf32>
    %7 = vector.broadcast %6 : vector<1x16xf32> to vector<16x16xf32>
    %8 = arith.addf %5, %7 : vector<16x16xf32>
    %cst_7 = arith.constant 0.000000e+00 : f32
    %9 = vector.broadcast %cst_7 : f32 to vector<16x16xf32>
    %10 = arith.maximumf %8, %9 : vector<16x16xf32>
    %11 = arith.truncf %10 : vector<16x16xf32> to vector<16x16xbf16>
    %c0_8 = arith.constant 0 : index
    %c0_9 = arith.constant 0 : index
    %c0_10 = arith.constant 0 : index
    %12 = vector.load %arg5[%c0_8, %c0_9, %c0_10] : memref<1x16x16xbf16, #tpu.memory_space<vmem>>, vector<1x16x16xbf16>
    %13 = vector.shape_cast %12 : vector<1x16x16xbf16> to vector<16x16xbf16>
    %14 = vector.shape_cast %11 : vector<16x16xbf16> to vector<1x16x16xbf16>
    tpu.vector_store %arg5[%c0_8, %c0_9, %c0_10], %14 {strides = array<i32>} : memref<1x16x16xbf16, #tpu.memory_space<vmem>>, vector<1x16x16xbf16>,
    return
  }
  func.func @transform_0(%arg0: i32, %arg1: i32) -> (i32, i32, i32) {
    %c0_i32 = arith.constant 0 : i32
    %c0_i32_0 = arith.constant 0 : i32
    return %arg0, %arg1, %c0_i32 : i32, i32, i32
  }
  func.func @transform_1(%arg0: i32, %arg1: i32) -> (i32, i32, i32) {
    %c0_i32 = arith.constant 0 : i32
    %c0_i32_0 = arith.constant 0 : i32
    %c0_i32_1 = arith.constant 0 : i32
    return %arg0, %c0_i32, %c0_i32_0 : i32, i32, i32
  }
  func.func @transform_2(%arg0: i32, %arg1: i32) -> (i32, i32) {
    %c0_i32 = arith.constant 0 : i32
    %c0_i32_0 = arith.constant 0 : i32
    %c0_i32_1 = arith.constant 0 : i32
    return %c0_i32, %c0_i32_0 : i32, i32
  }
  func.func @transform_3(%arg0: i32, %arg1: i32) -> (i32, i32, i32) {
    %c0_i32 = arith.constant 0 : i32
    %c0_i32_0 = arith.constant 0 : i32
    return %arg0, %arg1, %c0_i32 : i32, i32, i32
  }
}

module attributes {stable_mosaic.version = 11 : i64} {
  func.func @_stn_head_kernel(%arg0: i32, %arg1: memref<2x256xf32, #tpu.memory_space<vmem>>, %arg2: memref<256x128xbf16, #tpu.memory_space<vmem>>, %arg3: memref<1x128xf32, #tpu.memory_space<vmem>>, %arg4: memref<128x64xbf16, #tpu.memory_space<vmem>>, %arg5: memref<1x64xf32, #tpu.memory_space<vmem>>, %arg6: memref<64x16xbf16, #tpu.memory_space<vmem>>, %arg7: memref<1x16xf32, #tpu.memory_space<vmem>>, %arg8: memref<1x16xf32, #tpu.memory_space<vmem>>, %arg9: memref<2x16xf32, #tpu.memory_space<vmem>>) attributes {dimension_semantics = [#tpu.dimension_semantics<arbitrary>], iteration_bounds = array<i64: 1>, scalar_prefetch = 0 : i64, scratch_operands = 0 : i64, tpu.core_type = #tpu.core_type<tc>, window_params = [{pipeline_mode = #tpu.pipeline_mode<synchronous>, transform_indices = @transform_0, window_bounds = array<i64: 2, 256>}, {pipeline_mode = #tpu.pipeline_mode<synchronous>, transform_indices = @transform_1, window_bounds = array<i64: 256, 128>}, {pipeline_mode = #tpu.pipeline_mode<synchronous>, transform_indices = @transform_2, window_bounds = array<i64: 1, 128>}, {pipeline_mode = #tpu.pipeline_mode<synchronous>, transform_indices = @transform_3, window_bounds = array<i64: 128, 64>}, {pipeline_mode = #tpu.pipeline_mode<synchronous>, transform_indices = @transform_4, window_bounds = array<i64: 1, 64>}, {pipeline_mode = #tpu.pipeline_mode<synchronous>, transform_indices = @transform_5, window_bounds = array<i64: 64, 16>}, {pipeline_mode = #tpu.pipeline_mode<synchronous>, transform_indices = @transform_6, window_bounds = array<i64: 1, 16>}, {pipeline_mode = #tpu.pipeline_mode<synchronous>, transform_indices = @transform_7, window_bounds = array<i64: 1, 16>}, {pipeline_mode = #tpu.pipeline_mode<synchronous>, transform_indices = @transform_8, window_bounds = array<i64: 2, 16>}]} {
    %c0 = arith.constant 0 : index
    %c0_0 = arith.constant 0 : index
    %0 = vector.load %arg1[%c0, %c0_0] : memref<2x256xf32, #tpu.memory_space<vmem>>, vector<2x256xf32>
    %1 = arith.truncf %0 : vector<2x256xf32> to vector<2x256xbf16>
    %c0_1 = arith.constant 0 : index
    %c0_2 = arith.constant 0 : index
    %2 = vector.load %arg2[%c0_1, %c0_2] : memref<256x128xbf16, #tpu.memory_space<vmem>>, vector<256x128xbf16>
    %cst = arith.constant dense<0.000000e+00> : vector<2x128xf32>
    %3 = tpu.matmul %1, %2, %cst {dimension_numbers = #tpu.dot_dimension_numbers<[1], [0], [0], [1], [0, 0, 1, 1], [], []>} : vector<2x256xbf16>, vector<256x128xbf16>, vector<2x128xf32> -> vector<2x128xf32>
    %c0_3 = arith.constant 0 : index
    %c0_4 = arith.constant 0 : index
    %4 = vector.load %arg3[%c0_3, %c0_4] : memref<1x128xf32, #tpu.memory_space<vmem>>, vector<1x128xf32>
    %5 = vector.broadcast %4 : vector<1x128xf32> to vector<2x128xf32>
    %6 = arith.addf %3, %5 : vector<2x128xf32>
    %cst_5 = arith.constant 0.000000e+00 : f32
    %7 = vector.broadcast %cst_5 : f32 to vector<2x128xf32>
    %8 = arith.maximumf %6, %7 : vector<2x128xf32>
    %9 = arith.truncf %8 : vector<2x128xf32> to vector<2x128xbf16>
    %c0_6 = arith.constant 0 : index
    %c0_7 = arith.constant 0 : index
    %10 = vector.load %arg4[%c0_6, %c0_7] : memref<128x64xbf16, #tpu.memory_space<vmem>>, vector<128x64xbf16>
    %cst_8 = arith.constant dense<0.000000e+00> : vector<2x64xf32>
    %11 = tpu.matmul %9, %10, %cst_8 {dimension_numbers = #tpu.dot_dimension_numbers<[1], [0], [0], [1], [0, 0, 1, 1], [], []>} : vector<2x128xbf16>, vector<128x64xbf16>, vector<2x64xf32> -> vector<2x64xf32>
    %c0_9 = arith.constant 0 : index
    %c0_10 = arith.constant 0 : index
    %12 = vector.load %arg5[%c0_9, %c0_10] : memref<1x64xf32, #tpu.memory_space<vmem>>, vector<1x64xf32>
    %13 = vector.broadcast %12 : vector<1x64xf32> to vector<2x64xf32>
    %14 = arith.addf %11, %13 : vector<2x64xf32>
    %cst_11 = arith.constant 0.000000e+00 : f32
    %15 = vector.broadcast %cst_11 : f32 to vector<2x64xf32>
    %16 = arith.maximumf %14, %15 : vector<2x64xf32>
    %17 = arith.truncf %16 : vector<2x64xf32> to vector<2x64xbf16>
    %c0_12 = arith.constant 0 : index
    %c0_13 = arith.constant 0 : index
    %18 = vector.load %arg6[%c0_12, %c0_13] : memref<64x16xbf16, #tpu.memory_space<vmem>>, vector<64x16xbf16>
    %cst_14 = arith.constant dense<0.000000e+00> : vector<2x16xf32>
    %19 = tpu.matmul %17, %18, %cst_14 {dimension_numbers = #tpu.dot_dimension_numbers<[1], [0], [0], [1], [0, 0, 1, 1], [], []>} : vector<2x64xbf16>, vector<64x16xbf16>, vector<2x16xf32> -> vector<2x16xf32>
    %c0_15 = arith.constant 0 : index
    %c0_16 = arith.constant 0 : index
    %20 = vector.load %arg7[%c0_15, %c0_16] : memref<1x16xf32, #tpu.memory_space<vmem>>, vector<1x16xf32>
    %21 = vector.broadcast %20 : vector<1x16xf32> to vector<2x16xf32>
    %22 = arith.addf %19, %21 : vector<2x16xf32>
    %c0_17 = arith.constant 0 : index
    %c0_18 = arith.constant 0 : index
    %23 = vector.load %arg8[%c0_17, %c0_18] : memref<1x16xf32, #tpu.memory_space<vmem>>, vector<1x16xf32>
    %24 = vector.broadcast %23 : vector<1x16xf32> to vector<2x16xf32>
    %25 = arith.addf %22, %24 : vector<2x16xf32>
    %c0_19 = arith.constant 0 : index
    %c0_20 = arith.constant 0 : index
    %26 = vector.load %arg9[%c0_19, %c0_20] : memref<2x16xf32, #tpu.memory_space<vmem>>, vector<2x16xf32>
    tpu.vector_store %arg9[%c0_19, %c0_20], %25 {strides = array<i32>} : memref<2x16xf32, #tpu.memory_space<vmem>>, vector<2x16xf32>,
    return
  }
  func.func @transform_0(%arg0: i32) -> (i32, i32) {
    %c0_i32 = arith.constant 0 : i32
    %c0_i32_0 = arith.constant 0 : i32
    %c0_i32_1 = arith.constant 0 : i32
    return %c0_i32, %c0_i32_0 : i32, i32
  }
  func.func @transform_1(%arg0: i32) -> (i32, i32) {
    %c0_i32 = arith.constant 0 : i32
    %c0_i32_0 = arith.constant 0 : i32
    %c0_i32_1 = arith.constant 0 : i32
    return %c0_i32, %c0_i32_0 : i32, i32
  }
  func.func @transform_2(%arg0: i32) -> (i32, i32) {
    %c0_i32 = arith.constant 0 : i32
    %c0_i32_0 = arith.constant 0 : i32
    %c0_i32_1 = arith.constant 0 : i32
    return %c0_i32, %c0_i32_0 : i32, i32
  }
  func.func @transform_3(%arg0: i32) -> (i32, i32) {
    %c0_i32 = arith.constant 0 : i32
    %c0_i32_0 = arith.constant 0 : i32
    %c0_i32_1 = arith.constant 0 : i32
    return %c0_i32, %c0_i32_0 : i32, i32
  }
  func.func @transform_4(%arg0: i32) -> (i32, i32) {
    %c0_i32 = arith.constant 0 : i32
    %c0_i32_0 = arith.constant 0 : i32
    %c0_i32_1 = arith.constant 0 : i32
    return %c0_i32, %c0_i32_0 : i32, i32
  }
  func.func @transform_5(%arg0: i32) -> (i32, i32) {
    %c0_i32 = arith.constant 0 : i32
    %c0_i32_0 = arith.constant 0 : i32
    %c0_i32_1 = arith.constant 0 : i32
    return %c0_i32, %c0_i32_0 : i32, i32
  }
  func.func @transform_6(%arg0: i32) -> (i32, i32) {
    %c0_i32 = arith.constant 0 : i32
    %c0_i32_0 = arith.constant 0 : i32
    %c0_i32_1 = arith.constant 0 : i32
    return %c0_i32, %c0_i32_0 : i32, i32
  }
  func.func @transform_7(%arg0: i32) -> (i32, i32) {
    %c0_i32 = arith.constant 0 : i32
    %c0_i32_0 = arith.constant 0 : i32
    %c0_i32_1 = arith.constant 0 : i32
    return %c0_i32, %c0_i32_0 : i32, i32
  }
  func.func @transform_8(%arg0: i32) -> (i32, i32) {
    %c0_i32 = arith.constant 0 : i32
    %c0_i32_0 = arith.constant 0 : i32
    %c0_i32_1 = arith.constant 0 : i32
    return %c0_i32, %c0_i32_0 : i32, i32
  }
}

module attributes {stable_mosaic.version = 11 : i64} {
  func.func @_stn_conv_max_kernel(%arg0: i32, %arg1: i32, %arg2: memref<1x16x16xbf16, #tpu.memory_space<vmem>>, %arg3: memref<16x16xbf16, #tpu.memory_space<vmem>>, %arg4: memref<1x16xf32, #tpu.memory_space<vmem>>, %arg5: memref<16x32xbf16, #tpu.memory_space<vmem>>, %arg6: memref<1x32xf32, #tpu.memory_space<vmem>>, %arg7: memref<32x256xbf16, #tpu.memory_space<vmem>>, %arg8: memref<1x256xf32, #tpu.memory_space<vmem>>, %arg9: memref<1x1x256xf32, #tpu.memory_space<vmem>>, %arg10: memref<1x256xf32, #tpu.memory_space<vmem>>) attributes {dimension_semantics = [#tpu.dimension_semantics<parallel>, #tpu.dimension_semantics<arbitrary>], iteration_bounds = array<i64: 2, 1>, scalar_prefetch = 0 : i64, scratch_operands = 1 : i64, tpu.core_type = #tpu.core_type<tc>, window_params = [{transform_indices = @transform_0, window_bounds = array<i64: 1, 16, 16>}, {pipeline_mode = #tpu.pipeline_mode<synchronous>, transform_indices = @transform_1, window_bounds = array<i64: 16, 16>}, {pipeline_mode = #tpu.pipeline_mode<synchronous>, transform_indices = @transform_2, window_bounds = array<i64: 1, 16>}, {pipeline_mode = #tpu.pipeline_mode<synchronous>, transform_indices = @transform_3, window_bounds = array<i64: 16, 32>}, {pipeline_mode = #tpu.pipeline_mode<synchronous>, transform_indices = @transform_4, window_bounds = array<i64: 1, 32>}, {pipeline_mode = #tpu.pipeline_mode<synchronous>, transform_indices = @transform_5, window_bounds = array<i64: 32, 256>}, {pipeline_mode = #tpu.pipeline_mode<synchronous>, transform_indices = @transform_6, window_bounds = array<i64: 1, 256>}, {transform_indices = @transform_7, window_bounds = array<i64: 1, 1, 256>}]} {
    %c0_i32 = arith.constant 0 : i32
    %0 = arith.cmpi eq, %arg1, %c0_i32 : i32
    %1 = arith.extui %0 : i1 to i32
    %c0_i32_0 = arith.constant 0 : i32
    %2 = arith.cmpi ne, %1, %c0_i32_0 : i32
    scf.if %2 {
      %cst_27 = arith.constant 0xFF800000 : f32
      %36 = vector.broadcast %cst_27 : f32 to vector<1x256xf32>
      %c0_28 = arith.constant 0 : index
      %c0_29 = arith.constant 0 : index
      %37 = vector.load %arg10[%c0_28, %c0_29] : memref<1x256xf32, #tpu.memory_space<vmem>>, vector<1x256xf32>
      tpu.vector_store %arg10[%c0_28, %c0_29], %36 {strides = array<i32>} : memref<1x256xf32, #tpu.memory_space<vmem>>, vector<1x256xf32>,
    } else {
    }
    %c0 = arith.constant 0 : index
    %c0_1 = arith.constant 0 : index
    %c0_2 = arith.constant 0 : index
    %3 = vector.load %arg2[%c0, %c0_1, %c0_2] : memref<1x16x16xbf16, #tpu.memory_space<vmem>>, vector<1x16x16xbf16>
    %4 = vector.shape_cast %3 : vector<1x16x16xbf16> to vector<16x16xbf16>
    %c0_3 = arith.constant 0 : index
    %c0_4 = arith.constant 0 : index
    %5 = vector.load %arg3[%c0_3, %c0_4] : memref<16x16xbf16, #tpu.memory_space<vmem>>, vector<16x16xbf16>
    %cst = arith.constant dense<0.000000e+00> : vector<16x16xf32>
    %6 = tpu.matmul %4, %5, %cst {dimension_numbers = #tpu.dot_dimension_numbers<[1], [0], [0], [1], [0, 0, 1, 1], [], []>} : vector<16x16xbf16>, vector<16x16xbf16>, vector<16x16xf32> -> vector<16x16xf32>
    %c0_5 = arith.constant 0 : index
    %c0_6 = arith.constant 0 : index
    %7 = vector.load %arg4[%c0_5, %c0_6] : memref<1x16xf32, #tpu.memory_space<vmem>>, vector<1x16xf32>
    %8 = vector.broadcast %7 : vector<1x16xf32> to vector<16x16xf32>
    %9 = arith.addf %6, %8 : vector<16x16xf32>
    %cst_7 = arith.constant 0.000000e+00 : f32
    %10 = vector.broadcast %cst_7 : f32 to vector<16x16xf32>
    %11 = arith.maximumf %9, %10 : vector<16x16xf32>
    %12 = arith.truncf %11 : vector<16x16xf32> to vector<16x16xbf16>
    %c0_8 = arith.constant 0 : index
    %c0_9 = arith.constant 0 : index
    %13 = vector.load %arg5[%c0_8, %c0_9] : memref<16x32xbf16, #tpu.memory_space<vmem>>, vector<16x32xbf16>
    %cst_10 = arith.constant dense<0.000000e+00> : vector<16x32xf32>
    %14 = tpu.matmul %12, %13, %cst_10 {dimension_numbers = #tpu.dot_dimension_numbers<[1], [0], [0], [1], [0, 0, 1, 1], [], []>} : vector<16x16xbf16>, vector<16x32xbf16>, vector<16x32xf32> -> vector<16x32xf32>
    %c0_11 = arith.constant 0 : index
    %c0_12 = arith.constant 0 : index
    %15 = vector.load %arg6[%c0_11, %c0_12] : memref<1x32xf32, #tpu.memory_space<vmem>>, vector<1x32xf32>
    %16 = vector.broadcast %15 : vector<1x32xf32> to vector<16x32xf32>
    %17 = arith.addf %14, %16 : vector<16x32xf32>
    %cst_13 = arith.constant 0.000000e+00 : f32
    %18 = vector.broadcast %cst_13 : f32 to vector<16x32xf32>
    %19 = arith.maximumf %17, %18 : vector<16x32xf32>
    %20 = arith.truncf %19 : vector<16x32xf32> to vector<16x32xbf16>
    %c0_14 = arith.constant 0 : index
    %c0_15 = arith.constant 0 : index
    %21 = vector.load %arg7[%c0_14, %c0_15] : memref<32x256xbf16, #tpu.memory_space<vmem>>, vector<32x256xbf16>
    %cst_16 = arith.constant dense<0.000000e+00> : vector<16x256xf32>
    %22 = tpu.matmul %20, %21, %cst_16 {dimension_numbers = #tpu.dot_dimension_numbers<[1], [0], [0], [1], [0, 0, 1, 1], [], []>} : vector<16x32xbf16>, vector<32x256xbf16>, vector<16x256xf32> -> vector<16x256xf32>
    %c0_17 = arith.constant 0 : index
    %c0_18 = arith.constant 0 : index
    %23 = vector.load %arg8[%c0_17, %c0_18] : memref<1x256xf32, #tpu.memory_space<vmem>>, vector<1x256xf32>
    %24 = vector.broadcast %23 : vector<1x256xf32> to vector<16x256xf32>
    %25 = arith.addf %22, %24 : vector<16x256xf32>
    %cst_19 = arith.constant 0.000000e+00 : f32
    %26 = vector.broadcast %cst_19 : f32 to vector<16x256xf32>
    %27 = arith.maximumf %25, %26 : vector<16x256xf32>
    %c0_20 = arith.constant 0 : index
    %c0_21 = arith.constant 0 : index
    %28 = vector.load %arg10[%c0_20, %c0_21] : memref<1x256xf32, #tpu.memory_space<vmem>>, vector<1x256xf32>
    %cst_22 = arith.constant dense<0xFF800000> : vector<256xf32>
    %29 = vector.multi_reduction <maximumf>, %27, %cst_22 [0] : vector<16x256xf32> to vector<256xf32>
    %30 = vector.shape_cast %29 : vector<256xf32> to vector<1x256xf32>
    %31 = arith.maximumf %28, %30 : vector<1x256xf32>
    %c0_23 = arith.constant 0 : index
    %c0_24 = arith.constant 0 : index
    %32 = vector.load %arg10[%c0_23, %c0_24] : memref<1x256xf32, #tpu.memory_space<vmem>>, vector<1x256xf32>
    tpu.vector_store %arg10[%c0_23, %c0_24], %31 {strides = array<i32>} : memref<1x256xf32, #tpu.memory_space<vmem>>, vector<1x256xf32>,
    %c0_i32_25 = arith.constant 0 : i32
    %33 = arith.cmpi eq, %arg1, %c0_i32_25 : i32
    %34 = arith.extui %33 : i1 to i32
    %c0_i32_26 = arith.constant 0 : i32
    %35 = arith.cmpi ne, %34, %c0_i32_26 : i32
    scf.if %35 {
      %c0_27 = arith.constant 0 : index
      %c0_28 = arith.constant 0 : index
      %36 = vector.load %arg10[%c0_27, %c0_28] : memref<1x256xf32, #tpu.memory_space<vmem>>, vector<1x256xf32>
      %c0_29 = arith.constant 0 : index
      %c0_30 = arith.constant 0 : index
      %c0_31 = arith.constant 0 : index
      %37 = vector.load %arg9[%c0_29, %c0_30, %c0_31] : memref<1x1x256xf32, #tpu.memory_space<vmem>>, vector<1x1x256xf32>
      %38 = vector.shape_cast %37 : vector<1x1x256xf32> to vector<1x256xf32>
      %39 = vector.shape_cast %36 : vector<1x256xf32> to vector<1x1x256xf32>
      tpu.vector_store %arg9[%c0_29, %c0_30, %c0_31], %39 {strides = array<i32>} : memref<1x1x256xf32, #tpu.memory_space<vmem>>, vector<1x1x256xf32>,
    } else {
    }
    return
  }
  func.func @transform_0(%arg0: i32, %arg1: i32) -> (i32, i32, i32) {
    %c0_i32 = arith.constant 0 : i32
    %c0_i32_0 = arith.constant 0 : i32
    return %arg0, %arg1, %c0_i32 : i32, i32, i32
  }
  func.func @transform_1(%arg0: i32, %arg1: i32) -> (i32, i32) {
    %c0_i32 = arith.constant 0 : i32
    %c0_i32_0 = arith.constant 0 : i32
    %c0_i32_1 = arith.constant 0 : i32
    return %c0_i32, %c0_i32_0 : i32, i32
  }
  func.func @transform_2(%arg0: i32, %arg1: i32) -> (i32, i32) {
    %c0_i32 = arith.constant 0 : i32
    %c0_i32_0 = arith.constant 0 : i32
    %c0_i32_1 = arith.constant 0 : i32
    return %c0_i32, %c0_i32_0 : i32, i32
  }
  func.func @transform_3(%arg0: i32, %arg1: i32) -> (i32, i32) {
    %c0_i32 = arith.constant 0 : i32
    %c0_i32_0 = arith.constant 0 : i32
    %c0_i32_1 = arith.constant 0 : i32
    return %c0_i32, %c0_i32_0 : i32, i32
  }
  func.func @transform_4(%arg0: i32, %arg1: i32) -> (i32, i32) {
    %c0_i32 = arith.constant 0 : i32
    %c0_i32_0 = arith.constant 0 : i32
    %c0_i32_1 = arith.constant 0 : i32
    return %c0_i32, %c0_i32_0 : i32, i32
  }
  func.func @transform_5(%arg0: i32, %arg1: i32) -> (i32, i32) {
    %c0_i32 = arith.constant 0 : i32
    %c0_i32_0 = arith.constant 0 : i32
    %c0_i32_1 = arith.constant 0 : i32
    return %c0_i32, %c0_i32_0 : i32, i32
  }
  func.func @transform_6(%arg0: i32, %arg1: i32) -> (i32, i32) {
    %c0_i32 = arith.constant 0 : i32
    %c0_i32_0 = arith.constant 0 : i32
    %c0_i32_1 = arith.constant 0 : i32
    return %c0_i32, %c0_i32_0 : i32, i32
  }
  func.func @transform_7(%arg0: i32, %arg1: i32) -> (i32, i32, i32) {
    %c0_i32 = arith.constant 0 : i32
    %c0_i32_0 = arith.constant 0 : i32
    %c0_i32_1 = arith.constant 0 : i32
    return %arg0, %c0_i32, %c0_i32_0 : i32, i32, i32
  }
}

module attributes {stable_mosaic.version = 11 : i64} {
  func.func @_stn_head_kernel(%arg0: i32, %arg1: memref<2x256xf32, #tpu.memory_space<vmem>>, %arg2: memref<256x128xbf16, #tpu.memory_space<vmem>>, %arg3: memref<1x128xf32, #tpu.memory_space<vmem>>, %arg4: memref<128x64xbf16, #tpu.memory_space<vmem>>, %arg5: memref<1x64xf32, #tpu.memory_space<vmem>>, %arg6: memref<64x256xbf16, #tpu.memory_space<vmem>>, %arg7: memref<1x256xf32, #tpu.memory_space<vmem>>, %arg8: memref<1x256xf32, #tpu.memory_space<vmem>>, %arg9: memref<2x256xf32, #tpu.memory_space<vmem>>) attributes {dimension_semantics = [#tpu.dimension_semantics<arbitrary>], iteration_bounds = array<i64: 1>, scalar_prefetch = 0 : i64, scratch_operands = 0 : i64, tpu.core_type = #tpu.core_type<tc>, window_params = [{pipeline_mode = #tpu.pipeline_mode<synchronous>, transform_indices = @transform_0, window_bounds = array<i64: 2, 256>}, {pipeline_mode = #tpu.pipeline_mode<synchronous>, transform_indices = @transform_1, window_bounds = array<i64: 256, 128>}, {pipeline_mode = #tpu.pipeline_mode<synchronous>, transform_indices = @transform_2, window_bounds = array<i64: 1, 128>}, {pipeline_mode = #tpu.pipeline_mode<synchronous>, transform_indices = @transform_3, window_bounds = array<i64: 128, 64>}, {pipeline_mode = #tpu.pipeline_mode<synchronous>, transform_indices = @transform_4, window_bounds = array<i64: 1, 64>}, {pipeline_mode = #tpu.pipeline_mode<synchronous>, transform_indices = @transform_5, window_bounds = array<i64: 64, 256>}, {pipeline_mode = #tpu.pipeline_mode<synchronous>, transform_indices = @transform_6, window_bounds = array<i64: 1, 256>}, {pipeline_mode = #tpu.pipeline_mode<synchronous>, transform_indices = @transform_7, window_bounds = array<i64: 1, 256>}, {pipeline_mode = #tpu.pipeline_mode<synchronous>, transform_indices = @transform_8, window_bounds = array<i64: 2, 256>}]} {
    %c0 = arith.constant 0 : index
    %c0_0 = arith.constant 0 : index
    %0 = vector.load %arg1[%c0, %c0_0] : memref<2x256xf32, #tpu.memory_space<vmem>>, vector<2x256xf32>
    %1 = arith.truncf %0 : vector<2x256xf32> to vector<2x256xbf16>
    %c0_1 = arith.constant 0 : index
    %c0_2 = arith.constant 0 : index
    %2 = vector.load %arg2[%c0_1, %c0_2] : memref<256x128xbf16, #tpu.memory_space<vmem>>, vector<256x128xbf16>
    %cst = arith.constant dense<0.000000e+00> : vector<2x128xf32>
    %3 = tpu.matmul %1, %2, %cst {dimension_numbers = #tpu.dot_dimension_numbers<[1], [0], [0], [1], [0, 0, 1, 1], [], []>} : vector<2x256xbf16>, vector<256x128xbf16>, vector<2x128xf32> -> vector<2x128xf32>
    %c0_3 = arith.constant 0 : index
    %c0_4 = arith.constant 0 : index
    %4 = vector.load %arg3[%c0_3, %c0_4] : memref<1x128xf32, #tpu.memory_space<vmem>>, vector<1x128xf32>
    %5 = vector.broadcast %4 : vector<1x128xf32> to vector<2x128xf32>
    %6 = arith.addf %3, %5 : vector<2x128xf32>
    %cst_5 = arith.constant 0.000000e+00 : f32
    %7 = vector.broadcast %cst_5 : f32 to vector<2x128xf32>
    %8 = arith.maximumf %6, %7 : vector<2x128xf32>
    %9 = arith.truncf %8 : vector<2x128xf32> to vector<2x128xbf16>
    %c0_6 = arith.constant 0 : index
    %c0_7 = arith.constant 0 : index
    %10 = vector.load %arg4[%c0_6, %c0_7] : memref<128x64xbf16, #tpu.memory_space<vmem>>, vector<128x64xbf16>
    %cst_8 = arith.constant dense<0.000000e+00> : vector<2x64xf32>
    %11 = tpu.matmul %9, %10, %cst_8 {dimension_numbers = #tpu.dot_dimension_numbers<[1], [0], [0], [1], [0, 0, 1, 1], [], []>} : vector<2x128xbf16>, vector<128x64xbf16>, vector<2x64xf32> -> vector<2x64xf32>
    %c0_9 = arith.constant 0 : index
    %c0_10 = arith.constant 0 : index
    %12 = vector.load %arg5[%c0_9, %c0_10] : memref<1x64xf32, #tpu.memory_space<vmem>>, vector<1x64xf32>
    %13 = vector.broadcast %12 : vector<1x64xf32> to vector<2x64xf32>
    %14 = arith.addf %11, %13 : vector<2x64xf32>
    %cst_11 = arith.constant 0.000000e+00 : f32
    %15 = vector.broadcast %cst_11 : f32 to vector<2x64xf32>
    %16 = arith.maximumf %14, %15 : vector<2x64xf32>
    %17 = arith.truncf %16 : vector<2x64xf32> to vector<2x64xbf16>
    %c0_12 = arith.constant 0 : index
    %c0_13 = arith.constant 0 : index
    %18 = vector.load %arg6[%c0_12, %c0_13] : memref<64x256xbf16, #tpu.memory_space<vmem>>, vector<64x256xbf16>
    %cst_14 = arith.constant dense<0.000000e+00> : vector<2x256xf32>
    %19 = tpu.matmul %17, %18, %cst_14 {dimension_numbers = #tpu.dot_dimension_numbers<[1], [0], [0], [1], [0, 0, 1, 1], [], []>} : vector<2x64xbf16>, vector<64x256xbf16>, vector<2x256xf32> -> vector<2x256xf32>
    %c0_15 = arith.constant 0 : index
    %c0_16 = arith.constant 0 : index
    %20 = vector.load %arg7[%c0_15, %c0_16] : memref<1x256xf32, #tpu.memory_space<vmem>>, vector<1x256xf32>
    %21 = vector.broadcast %20 : vector<1x256xf32> to vector<2x256xf32>
    %22 = arith.addf %19, %21 : vector<2x256xf32>
    %c0_17 = arith.constant 0 : index
    %c0_18 = arith.constant 0 : index
    %23 = vector.load %arg8[%c0_17, %c0_18] : memref<1x256xf32, #tpu.memory_space<vmem>>, vector<1x256xf32>
    %24 = vector.broadcast %23 : vector<1x256xf32> to vector<2x256xf32>
    %25 = arith.addf %22, %24 : vector<2x256xf32>
    %c0_19 = arith.constant 0 : index
    %c0_20 = arith.constant 0 : index
    %26 = vector.load %arg9[%c0_19, %c0_20] : memref<2x256xf32, #tpu.memory_space<vmem>>, vector<2x256xf32>
    tpu.vector_store %arg9[%c0_19, %c0_20], %25 {strides = array<i32>} : memref<2x256xf32, #tpu.memory_space<vmem>>, vector<2x256xf32>,
    return
  }
  func.func @transform_0(%arg0: i32) -> (i32, i32) {
    %c0_i32 = arith.constant 0 : i32
    %c0_i32_0 = arith.constant 0 : i32
    %c0_i32_1 = arith.constant 0 : i32
    return %c0_i32, %c0_i32_0 : i32, i32
  }
  func.func @transform_1(%arg0: i32) -> (i32, i32) {
    %c0_i32 = arith.constant 0 : i32
    %c0_i32_0 = arith.constant 0 : i32
    %c0_i32_1 = arith.constant 0 : i32
    return %c0_i32, %c0_i32_0 : i32, i32
  }
  func.func @transform_2(%arg0: i32) -> (i32, i32) {
    %c0_i32 = arith.constant 0 : i32
    %c0_i32_0 = arith.constant 0 : i32
    %c0_i32_1 = arith.constant 0 : i32
    return %c0_i32, %c0_i32_0 : i32, i32
  }
  func.func @transform_3(%arg0: i32) -> (i32, i32) {
    %c0_i32 = arith.constant 0 : i32
    %c0_i32_0 = arith.constant 0 : i32
    %c0_i32_1 = arith.constant 0 : i32
    return %c0_i32, %c0_i32_0 : i32, i32
  }
  func.func @transform_4(%arg0: i32) -> (i32, i32) {
    %c0_i32 = arith.constant 0 : i32
    %c0_i32_0 = arith.constant 0 : i32
    %c0_i32_1 = arith.constant 0 : i32
    return %c0_i32, %c0_i32_0 : i32, i32
  }
  func.func @transform_5(%arg0: i32) -> (i32, i32) {
    %c0_i32 = arith.constant 0 : i32
    %c0_i32_0 = arith.constant 0 : i32
    %c0_i32_1 = arith.constant 0 : i32
    return %c0_i32, %c0_i32_0 : i32, i32
  }
  func.func @transform_6(%arg0: i32) -> (i32, i32) {
    %c0_i32 = arith.constant 0 : i32
    %c0_i32_0 = arith.constant 0 : i32
    %c0_i32_1 = arith.constant 0 : i32
    return %c0_i32, %c0_i32_0 : i32, i32
  }
  func.func @transform_7(%arg0: i32) -> (i32, i32) {
    %c0_i32 = arith.constant 0 : i32
    %c0_i32_0 = arith.constant 0 : i32
    %c0_i32_1 = arith.constant 0 : i32
    return %c0_i32, %c0_i32_0 : i32, i32
  }
  func.func @transform_8(%arg0: i32) -> (i32, i32) {
    %c0_i32 = arith.constant 0 : i32
    %c0_i32_0 = arith.constant 0 : i32
    %c0_i32_1 = arith.constant 0 : i32
    return %c0_i32, %c0_i32_0 : i32, i32
  }
}

module attributes {stable_mosaic.version = 11 : i64} {
  func.func @_feat_chain_max_kernel(%arg0: i32, %arg1: i32, %arg2: memref<1x16x16xbf16, #tpu.memory_space<vmem>>, %arg3: memref<1x16x32xbf16, #tpu.memory_space<vmem>>, %arg4: memref<1x32xf32, #tpu.memory_space<vmem>>, %arg5: memref<32x256xbf16, #tpu.memory_space<vmem>>, %arg6: memref<1x256xf32, #tpu.memory_space<vmem>>, %arg7: memref<1x1x256xf32, #tpu.memory_space<vmem>>, %arg8: memref<1x256xf32, #tpu.memory_space<vmem>>) attributes {dimension_semantics = [#tpu.dimension_semantics<parallel>, #tpu.dimension_semantics<arbitrary>], iteration_bounds = array<i64: 2, 1>, scalar_prefetch = 0 : i64, scratch_operands = 1 : i64, tpu.core_type = #tpu.core_type<tc>, window_params = [{transform_indices = @transform_0, window_bounds = array<i64: 1, 16, 16>}, {transform_indices = @transform_1, window_bounds = array<i64: 1, 16, 32>}, {pipeline_mode = #tpu.pipeline_mode<synchronous>, transform_indices = @transform_2, window_bounds = array<i64: 1, 32>}, {pipeline_mode = #tpu.pipeline_mode<synchronous>, transform_indices = @transform_3, window_bounds = array<i64: 32, 256>}, {pipeline_mode = #tpu.pipeline_mode<synchronous>, transform_indices = @transform_4, window_bounds = array<i64: 1, 256>}, {transform_indices = @transform_5, window_bounds = array<i64: 1, 1, 256>}]} {
    %c0_i32 = arith.constant 0 : i32
    %0 = arith.cmpi eq, %arg1, %c0_i32 : i32
    %1 = arith.extui %0 : i1 to i32
    %c0_i32_0 = arith.constant 0 : i32
    %2 = arith.cmpi ne, %1, %c0_i32_0 : i32
    scf.if %2 {
      %cst_21 = arith.constant 0xFF800000 : f32
      %27 = vector.broadcast %cst_21 : f32 to vector<1x256xf32>
      %c0_22 = arith.constant 0 : index
      %c0_23 = arith.constant 0 : index
      %28 = vector.load %arg8[%c0_22, %c0_23] : memref<1x256xf32, #tpu.memory_space<vmem>>, vector<1x256xf32>
      tpu.vector_store %arg8[%c0_22, %c0_23], %27 {strides = array<i32>} : memref<1x256xf32, #tpu.memory_space<vmem>>, vector<1x256xf32>,
    } else {
    }
    %c0 = arith.constant 0 : index
    %c0_1 = arith.constant 0 : index
    %c0_2 = arith.constant 0 : index
    %3 = vector.load %arg2[%c0, %c0_1, %c0_2] : memref<1x16x16xbf16, #tpu.memory_space<vmem>>, vector<1x16x16xbf16>
    %4 = vector.shape_cast %3 : vector<1x16x16xbf16> to vector<16x16xbf16>
    %c0_3 = arith.constant 0 : index
    %c0_4 = arith.constant 0 : index
    %c0_5 = arith.constant 0 : index
    %5 = vector.load %arg3[%c0_3, %c0_4, %c0_5] : memref<1x16x32xbf16, #tpu.memory_space<vmem>>, vector<1x16x32xbf16>
    %6 = vector.shape_cast %5 : vector<1x16x32xbf16> to vector<16x32xbf16>
    %cst = arith.constant dense<0.000000e+00> : vector<16x32xf32>
    %7 = tpu.matmul %4, %6, %cst {dimension_numbers = #tpu.dot_dimension_numbers<[1], [0], [0], [1], [0, 0, 1, 1], [], []>} : vector<16x16xbf16>, vector<16x32xbf16>, vector<16x32xf32> -> vector<16x32xf32>
    %c0_6 = arith.constant 0 : index
    %c0_7 = arith.constant 0 : index
    %8 = vector.load %arg4[%c0_6, %c0_7] : memref<1x32xf32, #tpu.memory_space<vmem>>, vector<1x32xf32>
    %9 = vector.broadcast %8 : vector<1x32xf32> to vector<16x32xf32>
    %10 = arith.addf %7, %9 : vector<16x32xf32>
    %cst_8 = arith.constant 0.000000e+00 : f32
    %11 = vector.broadcast %cst_8 : f32 to vector<16x32xf32>
    %12 = arith.maximumf %10, %11 : vector<16x32xf32>
    %13 = arith.truncf %12 : vector<16x32xf32> to vector<16x32xbf16>
    %c0_9 = arith.constant 0 : index
    %c0_10 = arith.constant 0 : index
    %14 = vector.load %arg5[%c0_9, %c0_10] : memref<32x256xbf16, #tpu.memory_space<vmem>>, vector<32x256xbf16>
    %cst_11 = arith.constant dense<0.000000e+00> : vector<16x256xf32>
    %15 = tpu.matmul %13, %14, %cst_11 {dimension_numbers = #tpu.dot_dimension_numbers<[1], [0], [0], [1], [0, 0, 1, 1], [], []>} : vector<16x32xbf16>, vector<32x256xbf16>, vector<16x256xf32> -> vector<16x256xf32>
    %c0_12 = arith.constant 0 : index
    %c0_13 = arith.constant 0 : index
    %16 = vector.load %arg6[%c0_12, %c0_13] : memref<1x256xf32, #tpu.memory_space<vmem>>, vector<1x256xf32>
    %17 = vector.broadcast %16 : vector<1x256xf32> to vector<16x256xf32>
    %18 = arith.addf %15, %17 : vector<16x256xf32>
    %c0_14 = arith.constant 0 : index
    %c0_15 = arith.constant 0 : index
    %19 = vector.load %arg8[%c0_14, %c0_15] : memref<1x256xf32, #tpu.memory_space<vmem>>, vector<1x256xf32>
    %cst_16 = arith.constant dense<0xFF800000> : vector<256xf32>
    %20 = vector.multi_reduction <maximumf>, %18, %cst_16 [0] : vector<16x256xf32> to vector<256xf32>
    %21 = vector.shape_cast %20 : vector<256xf32> to vector<1x256xf32>
    %22 = arith.maximumf %19, %21 : vector<1x256xf32>
    %c0_17 = arith.constant 0 : index
    %c0_18 = arith.constant 0 : index
    %23 = vector.load %arg8[%c0_17, %c0_18] : memref<1x256xf32, #tpu.memory_space<vmem>>, vector<1x256xf32>
    tpu.vector_store %arg8[%c0_17, %c0_18], %22 {strides = array<i32>} : memref<1x256xf32, #tpu.memory_space<vmem>>, vector<1x256xf32>,
    %c0_i32_19 = arith.constant 0 : i32
    %24 = arith.cmpi eq, %arg1, %c0_i32_19 : i32
    %25 = arith.extui %24 : i1 to i32
    %c0_i32_20 = arith.constant 0 : i32
    %26 = arith.cmpi ne, %25, %c0_i32_20 : i32
    scf.if %26 {
      %c0_21 = arith.constant 0 : index
      %c0_22 = arith.constant 0 : index
      %27 = vector.load %arg8[%c0_21, %c0_22] : memref<1x256xf32, #tpu.memory_space<vmem>>, vector<1x256xf32>
      %c0_23 = arith.constant 0 : index
      %c0_24 = arith.constant 0 : index
      %c0_25 = arith.constant 0 : index
      %28 = vector.load %arg7[%c0_23, %c0_24, %c0_25] : memref<1x1x256xf32, #tpu.memory_space<vmem>>, vector<1x1x256xf32>
      %29 = vector.shape_cast %28 : vector<1x1x256xf32> to vector<1x256xf32>
      %30 = vector.shape_cast %27 : vector<1x256xf32> to vector<1x1x256xf32>
      tpu.vector_store %arg7[%c0_23, %c0_24, %c0_25], %30 {strides = array<i32>} : memref<1x1x256xf32, #tpu.memory_space<vmem>>, vector<1x1x256xf32>,
    } else {
    }
    return
  }
  func.func @transform_0(%arg0: i32, %arg1: i32) -> (i32, i32, i32) {
    %c0_i32 = arith.constant 0 : i32
    %c0_i32_0 = arith.constant 0 : i32
    return %arg0, %arg1, %c0_i32 : i32, i32, i32
  }
  func.func @transform_1(%arg0: i32, %arg1: i32) -> (i32, i32, i32) {
    %c0_i32 = arith.constant 0 : i32
    %c0_i32_0 = arith.constant 0 : i32
    %c0_i32_1 = arith.constant 0 : i32
    return %arg0, %c0_i32, %c0_i32_0 : i32, i32, i32
  }
  func.func @transform_2(%arg0: i32, %arg1: i32) -> (i32, i32) {
    %c0_i32 = arith.constant 0 : i32
    %c0_i32_0 = arith.constant 0 : i32
    %c0_i32_1 = arith.constant 0 : i32
    return %c0_i32, %c0_i32_0 : i32, i32
  }
  func.func @transform_3(%arg0: i32, %arg1: i32) -> (i32, i32) {
    %c0_i32 = arith.constant 0 : i32
    %c0_i32_0 = arith.constant 0 : i32
    %c0_i32_1 = arith.constant 0 : i32
    return %c0_i32, %c0_i32_0 : i32, i32
  }
  func.func @transform_4(%arg0: i32, %arg1: i32) -> (i32, i32) {
    %c0_i32 = arith.constant 0 : i32
    %c0_i32_0 = arith.constant 0 : i32
    %c0_i32_1 = arith.constant 0 : i32
    return %c0_i32, %c0_i32_0 : i32, i32
  }
  func.func @transform_5(%arg0: i32, %arg1: i32) -> (i32, i32, i32) {
    %c0_i32 = arith.constant 0 : i32
    %c0_i32_0 = arith.constant 0 : i32
    %c0_i32_1 = arith.constant 0 : i32
    return %arg0, %c0_i32, %c0_i32_0 : i32, i32, i32
  }
}

module attributes {stable_mosaic.version = 11 : i64} {
  func.func @_regressor_kernel(%arg0: i32, %arg1: i32, %arg2: memref<1x16x16xbf16, #tpu.memory_space<vmem>>, %arg3: memref<1x16x128xbf16, #tpu.memory_space<vmem>>, %arg4: memref<1x1x128xf32, #tpu.memory_space<vmem>>, %arg5: memref<128x64xbf16, #tpu.memory_space<vmem>>, %arg6: memref<1x64xf32, #tpu.memory_space<vmem>>, %arg7: memref<64x32xbf16, #tpu.memory_space<vmem>>, %arg8: memref<1x32xf32, #tpu.memory_space<vmem>>, %arg9: memref<32x2xbf16, #tpu.memory_space<vmem>>, %arg10: memref<1x2xf32, #tpu.memory_space<vmem>>, %arg11: memref<1x2x16xf32, #tpu.memory_space<vmem>>) attributes {dimension_semantics = [#tpu.dimension_semantics<parallel>, #tpu.dimension_semantics<parallel>], iteration_bounds = array<i64: 2, 1>, scalar_prefetch = 0 : i64, scratch_operands = 0 : i64, tpu.core_type = #tpu.core_type<tc>, window_params = [{transform_indices = @transform_0, window_bounds = array<i64: 1, 16, 16>}, {transform_indices = @transform_1, window_bounds = array<i64: 1, 16, 128>}, {transform_indices = @transform_2, window_bounds = array<i64: 1, 1, 128>}, {pipeline_mode = #tpu.pipeline_mode<synchronous>, transform_indices = @transform_3, window_bounds = array<i64: 128, 64>}, {pipeline_mode = #tpu.pipeline_mode<synchronous>, transform_indices = @transform_4, window_bounds = array<i64: 1, 64>}, {pipeline_mode = #tpu.pipeline_mode<synchronous>, transform_indices = @transform_5, window_bounds = array<i64: 64, 32>}, {pipeline_mode = #tpu.pipeline_mode<synchronous>, transform_indices = @transform_6, window_bounds = array<i64: 1, 32>}, {pipeline_mode = #tpu.pipeline_mode<synchronous>, transform_indices = @transform_7, window_bounds = array<i64: 32, 2>}, {pipeline_mode = #tpu.pipeline_mode<synchronous>, transform_indices = @transform_8, window_bounds = array<i64: 1, 2>}, {transform_indices = @transform_9, window_bounds = array<i64: 1, 2, 16>}]} {
    %c0 = arith.constant 0 : index
    %c0_0 = arith.constant 0 : index
    %c0_1 = arith.constant 0 : index
    %0 = vector.load %arg2[%c0, %c0_0, %c0_1] : memref<1x16x16xbf16, #tpu.memory_space<vmem>>, vector<1x16x16xbf16>
    %1 = vector.shape_cast %0 : vector<1x16x16xbf16> to vector<16x16xbf16>
    %c0_2 = arith.constant 0 : index
    %c0_3 = arith.constant 0 : index
    %c0_4 = arith.constant 0 : index
    %2 = vector.load %arg3[%c0_2, %c0_3, %c0_4] : memref<1x16x128xbf16, #tpu.memory_space<vmem>>, vector<1x16x128xbf16>
    %3 = vector.shape_cast %2 : vector<1x16x128xbf16> to vector<16x128xbf16>
    %cst = arith.constant dense<0.000000e+00> : vector<16x128xf32>
    %4 = tpu.matmul %1, %3, %cst {dimension_numbers = #tpu.dot_dimension_numbers<[1], [0], [0], [1], [0, 0, 1, 1], [], []>} : vector<16x16xbf16>, vector<16x128xbf16>, vector<16x128xf32> -> vector<16x128xf32>
    %c0_5 = arith.constant 0 : index
    %c0_6 = arith.constant 0 : index
    %c0_7 = arith.constant 0 : index
    %5 = vector.load %arg4[%c0_5, %c0_6, %c0_7] : memref<1x1x128xf32, #tpu.memory_space<vmem>>, vector<1x1x128xf32>
    %6 = vector.shape_cast %5 : vector<1x1x128xf32> to vector<1x128xf32>
    %7 = vector.broadcast %6 : vector<1x128xf32> to vector<16x128xf32>
    %8 = arith.addf %4, %7 : vector<16x128xf32>
    %cst_8 = arith.constant 0.000000e+00 : f32
    %9 = vector.broadcast %cst_8 : f32 to vector<16x128xf32>
    %10 = arith.maximumf %8, %9 : vector<16x128xf32>
    %11 = arith.truncf %10 : vector<16x128xf32> to vector<16x128xbf16>
    %c0_9 = arith.constant 0 : index
    %c0_10 = arith.constant 0 : index
    %12 = vector.load %arg5[%c0_9, %c0_10] : memref<128x64xbf16, #tpu.memory_space<vmem>>, vector<128x64xbf16>
    %cst_11 = arith.constant dense<0.000000e+00> : vector<16x64xf32>
    %13 = tpu.matmul %11, %12, %cst_11 {dimension_numbers = #tpu.dot_dimension_numbers<[1], [0], [0], [1], [0, 0, 1, 1], [], []>} : vector<16x128xbf16>, vector<128x64xbf16>, vector<16x64xf32> -> vector<16x64xf32>
    %c0_12 = arith.constant 0 : index
    %c0_13 = arith.constant 0 : index
    %14 = vector.load %arg6[%c0_12, %c0_13] : memref<1x64xf32, #tpu.memory_space<vmem>>, vector<1x64xf32>
    %15 = vector.broadcast %14 : vector<1x64xf32> to vector<16x64xf32>
    %16 = arith.addf %13, %15 : vector<16x64xf32>
    %cst_14 = arith.constant 0.000000e+00 : f32
    %17 = vector.broadcast %cst_14 : f32 to vector<16x64xf32>
    %18 = arith.maximumf %16, %17 : vector<16x64xf32>
    %19 = arith.truncf %18 : vector<16x64xf32> to vector<16x64xbf16>
    %c0_15 = arith.constant 0 : index
    %c0_16 = arith.constant 0 : index
    %20 = vector.load %arg7[%c0_15, %c0_16] : memref<64x32xbf16, #tpu.memory_space<vmem>>, vector<64x32xbf16>
    %cst_17 = arith.constant dense<0.000000e+00> : vector<16x32xf32>
    %21 = tpu.matmul %19, %20, %cst_17 {dimension_numbers = #tpu.dot_dimension_numbers<[1], [0], [0], [1], [0, 0, 1, 1], [], []>} : vector<16x64xbf16>, vector<64x32xbf16>, vector<16x32xf32> -> vector<16x32xf32>
    %c0_18 = arith.constant 0 : index
    %c0_19 = arith.constant 0 : index
    %22 = vector.load %arg8[%c0_18, %c0_19] : memref<1x32xf32, #tpu.memory_space<vmem>>, vector<1x32xf32>
    %23 = vector.broadcast %22 : vector<1x32xf32> to vector<16x32xf32>
    %24 = arith.addf %21, %23 : vector<16x32xf32>
    %cst_20 = arith.constant 0.000000e+00 : f32
    %25 = vector.broadcast %cst_20 : f32 to vector<16x32xf32>
    %26 = arith.maximumf %24, %25 : vector<16x32xf32>
    %27 = arith.truncf %26 : vector<16x32xf32> to vector<16x32xbf16>
    %c0_21 = arith.constant 0 : index
    %c0_22 = arith.constant 0 : index
    %28 = vector.load %arg9[%c0_21, %c0_22] : memref<32x2xbf16, #tpu.memory_space<vmem>>, vector<32x2xbf16>
    %cst_23 = arith.constant dense<0.000000e+00> : vector<16x2xf32>
    %29 = tpu.matmul %27, %28, %cst_23 {dimension_numbers = #tpu.dot_dimension_numbers<[1], [0], [0], [1], [0, 0, 1, 1], [], []>} : vector<16x32xbf16>, vector<32x2xbf16>, vector<16x2xf32> -> vector<16x2xf32>
    %c0_24 = arith.constant 0 : index
    %c0_25 = arith.constant 0 : index
    %30 = vector.load %arg10[%c0_24, %c0_25] : memref<1x2xf32, #tpu.memory_space<vmem>>, vector<1x2xf32>
    %31 = vector.broadcast %30 : vector<1x2xf32> to vector<16x2xf32>
    %32 = arith.addf %29, %31 : vector<16x2xf32>
    %33 = tpu.transpose %32, [1, 0] : vector<16x2xf32> -> vector<2x16xf32>
    %c0_26 = arith.constant 0 : index
    %c0_27 = arith.constant 0 : index
    %c0_28 = arith.constant 0 : index
    %34 = vector.load %arg11[%c0_26, %c0_27, %c0_28] : memref<1x2x16xf32, #tpu.memory_space<vmem>>, vector<1x2x16xf32>
    %35 = vector.shape_cast %34 : vector<1x2x16xf32> to vector<2x16xf32>
    %36 = vector.shape_cast %33 : vector<2x16xf32> to vector<1x2x16xf32>
    tpu.vector_store %arg11[%c0_26, %c0_27, %c0_28], %36 {strides = array<i32>} : memref<1x2x16xf32, #tpu.memory_space<vmem>>, vector<1x2x16xf32>,
    return
  }
  func.func @transform_0(%arg0: i32, %arg1: i32) -> (i32, i32, i32) {
    %c0_i32 = arith.constant 0 : i32
    %c0_i32_0 = arith.constant 0 : i32
    return %arg0, %arg1, %c0_i32 : i32, i32, i32
  }
  func.func @transform_1(%arg0: i32, %arg1: i32) -> (i32, i32, i32) {
    %c0_i32 = arith.constant 0 : i32
    %c0_i32_0 = arith.constant 0 : i32
    %c0_i32_1 = arith.constant 0 : i32
    return %arg0, %c0_i32, %c0_i32_0 : i32, i32, i32
  }
  func.func @transform_2(%arg0: i32, %arg1: i32) -> (i32, i32, i32) {
    %c0_i32 = arith.constant 0 : i32
    %c0_i32_0 = arith.constant 0 : i32
    %c0_i32_1 = arith.constant 0 : i32
    return %arg0, %c0_i32, %c0_i32_0 : i32, i32, i32
  }
  func.func @transform_3(%arg0: i32, %arg1: i32) -> (i32, i32) {
    %c0_i32 = arith.constant 0 : i32
    %c0_i32_0 = arith.constant 0 : i32
    %c0_i32_1 = arith.constant 0 : i32
    return %c0_i32, %c0_i32_0 : i32, i32
  }
  func.func @transform_4(%arg0: i32, %arg1: i32) -> (i32, i32) {
    %c0_i32 = arith.constant 0 : i32
    %c0_i32_0 = arith.constant 0 : i32
    %c0_i32_1 = arith.constant 0 : i32
    return %c0_i32, %c0_i32_0 : i32, i32
  }
  func.func @transform_5(%arg0: i32, %arg1: i32) -> (i32, i32) {
    %c0_i32 = arith.constant 0 : i32
    %c0_i32_0 = arith.constant 0 : i32
    %c0_i32_1 = arith.constant 0 : i32
    return %c0_i32, %c0_i32_0 : i32, i32
  }
  func.func @transform_6(%arg0: i32, %arg1: i32) -> (i32, i32) {
    %c0_i32 = arith.constant 0 : i32
    %c0_i32_0 = arith.constant 0 : i32
    %c0_i32_1 = arith.constant 0 : i32
    return %c0_i32, %c0_i32_0 : i32, i32
  }
  func.func @transform_7(%arg0: i32, %arg1: i32) -> (i32, i32) {
    %c0_i32 = arith.constant 0 : i32
    %c0_i32_0 = arith.constant 0 : i32
    %c0_i32_1 = arith.constant 0 : i32
    return %c0_i32, %c0_i32_0 : i32, i32
  }
  func.func @transform_8(%arg0: i32, %arg1: i32) -> (i32, i32) {
    %c0_i32 = arith.constant 0 : i32
    %c0_i32_0 = arith.constant 0 : i32
    %c0_i32_1 = arith.constant 0 : i32
    return %c0_i32, %c0_i32_0 : i32, i32
  }
  func.func @transform_9(%arg0: i32, %arg1: i32) -> (i32, i32, i32) {
    %c0_i32 = arith.constant 0 : i32
    %c0_i32_0 = arith.constant 0 : i32
    return %arg0, %c0_i32, %arg1 : i32, i32, i32
  }
}

</mosaic_0001>

<bundles_post_ra>
// kernel: basic_pointnet_forward.9
= control target key start
LH: loop header
LB: loop body
LE: loop exit
PB: predicated region body
PF: predicated region fallthrough
CT: control target
= control target key end

     0   :  { %s500_s12 = smov 0   ;;  %s502_s13 = smov 0   ;;  %s539_s0 = inlined_call_operand.vmem [shape: f32[2,16,4], index: 0, kind: input, shape index: {}]   ;;  %s540_s1 = inlined_call_operand.vmem [shape: bf16[2,4,16], index: 1, kind: input, shape index: {}]   ;;  %s541_s2 = inlined_call_operand.vmem [shape: f32[1,16], index: 2, kind: input, shape index: {}]   ;;  %s542_s3 = inlined_call_operand.vmem [shape: bf16[2,16,16], index: 3, kind: output, shape index: {}]  }
   0x1   :  { %s504_s14 = smov 0  }
   0x2 LB: > { %s25_s15 = sadd.s32 1, %s472_s13  ;;  %p404_p0 = scmp.ge.s32.totalorder %s476_s14, 1  ;;  %s476_s14 = sphi %s504_s14, %s13_s14   ;;  %s472_s13 = sphi %s502_s13, %s544_s13   ;;  %s468_s12 = sphi %s500_s12, %s543_s12  }
   0x3   : > { %p27_p1 = scmp.ge.s32.totalorder %s25_s15, 2  ;;  %p167_p2 = scmp.lt.s32.totalorder %s476_s14, 3 }
   0x5   : > { %s546_s15 = smov (%p27_p1, %s25_s15), 0  ;;  %p168_p3 = pnand %p404_p0, %p167_p2 }
   0x6   : > { %p204_p4 = scmp.lt.s32.totalorder (!%p168_p3), %s468_s12, 1 }
   0x7   : > { %171 = sbr.rel (%p168_p3) target bundleno = 224 (0xe0), region = 32 }
   0xc   : > { %v478_v0 = vmov 0.0   ;;  %vm479_vm0 = vmmov 0   ;;  %s548_s12 = smov (!%p204_p4, %s468_s12), 1  ;;  %vm243_vm1 = vcmask 1041408   ;;  %vm239_vm2 = vcmask 31744  }
   0xd   : > { %422 = vmatprep.subr.bf16.mxu0 %v478_v0  ;;  %424 = vmatprep.mubr.msk.bf16.mxu0 %vm479_vm0, %v478_v0  ;;  %s407_s16 = sshll.u32 %s548_s12, 1  ;;  %s416_s17 = sshll.u32 %s548_s12, 4  ;;  %v410_v6 = vld [vmem:[%s541_s2] ss:$0 sm:$0xff]  ;;  %vm298_vm3 = vcmask 125952  }
   0xe   : > { %s216_s20 = scalar_lea.vmem %s540_s1, %s407_s16  ;;  %s211_s23 = scalar_lea.vmem %s539_s0, %s416_s17 }
   0xf   : > { %v231_v1 = vld [vmem:[%s216_s20] sm:$0x3]  ;;  %v229_v3 = vld [vmem:[%s211_s23 + $0x8] sm:$0xff]  ;;  %s417_s26 = sshll.u32 %s548_s12, 3 }
  0x10   : > { %v228_v2 = vld [vmem:[%s211_s23] sm:$0xff]  ;;  %v245_v4 = vsel %vm243_vm1, %v231_v1, 0  ;;  %s225_s29 = scalar_lea.vmem %s542_s3, %s417_s26 }
  0x11   : > { %v230_v5 = vpack.c.bf16 %v229_v3, %v228_v2  ;;  %423 = vmatpush3.bf16.msra.mxu0 %v245_v4 }
  0x14   : > { %425 = vmatmul.mubr.msk.bf16.vlgmr.msra.gmra.mxu0 %vm239_vm2, %v230_v5 }
  0xd4   : > { %v281_v7 = vpop.f32.mrf.mxu0 }
  0xd5   : > { %v282_v8 = vadd.f32 %v410_v6, %v281_v7 }
  0xd6   : > { %v426_v9 = vpop.f32.mrf.mxu0 }
  0xd7   : > { %v288_v10 = vmax.f32 %v282_v8, 0.0 }
  0xd8   : > { %v284_v11 = vpop.f32.mrf.mxu0 }
  0xd9   : > { %v418_v12 = vpack.c.bf16 %v288_v10, %v288_v10  ;;  %v285_v13 = vadd.f32 %v410_v6, %v284_v11 }
  0xda   : > { %v427_v14 = vpop.f32.mrf.mxu0 }
  0xdb   : > { %299 = vst.msk [vmem:[%s225_s29] sm:$0xf] %vm298_vm3, %v418_v12  ;;  %v289_v15 = vmax.f32 %v285_v13, 0.0 }
  0xdd   : > { %v419_v16 = vpack.c.bf16 %v289_v15, %v289_v15 }
  0xdf   : > { %300 = vst.msk [vmem:[%s225_s29 + $0x4] sm:$0xf] %vm298_vm3, %v419_v16 }
  0xe0 PF: > { %s13_s14 = sadd.s32 1, %s476_s14   ;;  %s543_s12 = smov %s472_s13 }
  0xe1   : > { %p10_p5 = scmp.ge.s32.totalorder %s13_s14, 4   ;;  %s544_s13 = smov %s546_s15 }
  0xe3   :  { %12 = sbr.rel (!%p10_p5) target bundleno = 2 (0x2), region = 65 }

// kernel: basic_pointnet_forward.7
= control target key start
LH: loop header
LB: loop body
LE: loop exit
PB: predicated region body
PF: predicated region fallthrough
CT: control target
= control target key end

     0   :  { %s781_s24 = smov 0   ;;  %s783_s25 = smov 0   ;;  %s855_s0 = inlined_call_operand.vmem [shape: f32[2,16,4], index: 0, kind: input, shape index: {}]   ;;  %s856_s1 = inlined_call_operand.vmem [shape: bf16[4,16], index: 1, kind: input, shape index: {}]   ;;  %s857_s2 = inlined_call_operand.vmem [shape: f32[1,16], index: 2, kind: input, shape index: {}]   ;;  %s858_s3 = inlined_call_operand.vmem [shape: bf16[16,32], index: 3, kind: input, shape index: {}]   ;;  %s859_s4 = inlined_call_operand.vmem [shape: f32[1,32], index: 4, kind: input, shape index: {}]   ;;  %s860_s5 = inlined_call_operand.vmem [shape: bf16[32,256], index: 5, kind: input, shape index: {}]   ;;  %s861_s6 = inlined_call_operand.vmem [shape: f32[1,256], index: 6, kind: input, shape index: {}]   ;;  %s862_s7 = inlined_call_operand.vmem [shape: f32[2,1,256], index: 7, kind: output, shape index: {}]  }
   0x1   :  { %s785_s26 = smov 0  }
   0x2 LB: > { %s29_s27 = sadd.s32 1, %s730_s25  ;;  %p643_p0 = scmp.ge.s32.totalorder %s734_s26, 1  ;;  %s734_s26 = sphi %s785_s26, %s17_s26   ;;  %s730_s25 = sphi %s783_s25, %s866_s25   ;;  %s726_s24 = sphi %s781_s24, %s865_s24  }
   0x3   : > { %p31_p1 = scmp.ge.s32.totalorder %s29_s27, 2  ;;  %p256_p2 = scmp.lt.s32.totalorder %s734_s26, 3 }
   0x5   : > { %s868_s27 = smov (%p31_p1, %s29_s27), 0  ;;  %p257_p3 = pnand %p643_p0, %p256_p2 }
   0x6   : > { %p292_p4 = scmp.lt.s32.totalorder (!%p257_p3), %s726_s24, 1 }
   0x7   : > { %260 = sbr.rel (%p257_p3) target bundleno = 658 (0x292), region = 48 }
   0xc   : > { %v318_v0 = vld [vmem:[%s856_s1] sm:$0x3]  ;;  %vm330_vm0 = vcmask 1041408   ;;  %v736_v1 = vmov 0.0   ;;  %vm737_vm1 = vmmov 0   ;;  %s870_s24 = smov (!%p292_p4, %s726_s24), 1  ;;  %v310_v22 = vlaneseq }
   0xd   : > { %664 = vmatprep.subr.bf16.mxu0 %v736_v1  ;;  %v332_v2 = vsel %vm330_vm0, %v318_v0, 0  ;;  %666 = vmatprep.mubr.msk.bf16.mxu0 %vm737_vm1, %v736_v1  ;;  %s659_s30 = sshll.u32 %s870_s24, 4  ;;  %vm326_vm2 = vcmask 31744   ;;  %v705_v6 = vld [vmem:[%s858_s3] sm:$0xff]   ;;  %vm393_vm3 = vcmask 130048   ;;  %v738_v21 = vmov 0  }
   0xe   : > { %665 = vmatpush3.bf16.msra.mxu0 %v332_v2  ;;  %670 = vmatprep.subr.bf16.mxu1 %v736_v1  ;;  %s299_s10 = scalar_lea.vmem %s855_s0, %s659_s30  ;;  %v647_v7 = vld [vmem:[%s857_s2] ss:$0 sm:$0xff]  ;;  %v708_v17 = vld [vmem:[%s860_s5 + $0x14] ss:$8 sps:$4 sm:$0xff]   ;;  %v706_v18 = vld [vmem:[%s860_s5 + $0x10] ss:$8 sps:$4 sm:$0xff]  }
   0xf   : > { %672 = vmatprep.mubr.msk.bf16.mxu1 %vm737_vm1, %v736_v1  ;;  %v315_v3 = vld [vmem:[%s299_s10] sm:$0xff]  ;;  %v316_v4 = vld [vmem:[%s299_s10 + $0x8] sm:$0xff]  ;;  %671 = vmatpush3.bf16.msra.mxu1 %v705_v6  ;;  %vm826_vm4 = vcmp.lt.s32.totalorder %v310_v22, 256  ;;  %v739_v24 = vmov -inf   ;;  %vm477_vm5 = vcmask 261120   ;;  %v448_v35 = vshrl.u32 %v310_v22, 7 }
  0x10   : > { %v317_v5 = vpack.c.bf16 %v316_v4, %v315_v3  ;;  %493 = vmatprep.subr.bf16.mxu0 %v708_v17  ;;  %v711_v19 = vld [vmem:[%s860_s5 + $0x4] ss:$8 sps:$4 sm:$0xff]   ;;  %v709_v20 = vld [vmem:[%s860_s5] ss:$8 sps:$4 sm:$0xff]   ;;  %314 = vst.msk [vmem:[#allocation2] sm:$0x3] %vm826_vm4, %v739_v24 }
  0x11   : > { %v649_v25 = vld [vmem:[%s859_s4] ss:$0 sm:$0xff]  ;;  %v449_v36 = vsub.s32 0, %v448_v35  ;;  %v453_v38 = vsub.s32 1, %v448_v35  ;;  %v740_v58 = vmov 1966171168  }
  0x12   : > { %667 = vmatmul.mubr.msk.bf16.vlgmr.msra.gmra.mxu0 %vm326_vm2, %v317_v5  ;;  %v445_v37 = vld [vmem:[%s861_s6] sm:$0x3]  ;;  %v547_v59 = vunpack.c.l.s4 %v740_v58  ;;  %s646_s8 = sshll.u32 %s870_s24, 1 }
  0x13   : > { %494 = vmatpush1.bf16.msra.mxu0 %v706_v18  ;;  %513 = vmatprep.mubr.bf16.mxu0 %v738_v21  ;;  %v450_v39 = vrot.slane %v445_v37, %v449_v36  ;;  %v454_v41 = vrot.slane %v445_v37, %v453_v38  ;;  %s304_s11 = scalar_lea.vmem %s862_s7, %s646_s8 }
  0x14   : > { %495 = vmatprep.subr.bf16.mxu0 %v711_v19  ;;  %v548_v0 = vunpack.c.0.s8 %v547_v59 }
  0x16   : > { %v551_v4 = vsub.s32 %v548_v0, %v448_v35 }
  0x17   : > { %496 = vmatpush1.bf16.msra.mxu0 %v709_v20 }
  0xd2   : > { %v368_v8 = vpop.f32.mrf.mxu0 }
  0xd3   : > { %v369_v10 = vadd.f32 %v647_v7, %v368_v8 }
  0xd4   : > { %v668_v9 = vpop.f32.mrf.mxu0 }
  0xd5   : > { %v375_v14 = vmax.f32 %v369_v10, 0.0  ;;  %v528_v9 = vld [vmem:[#allocation2] sm:$0x3] }
  0xd6   : > { %v371_v11 = vpop.f32.mrf.mxu0 }
  0xd7   : > { %v372_v12 = vadd.f32 %v647_v7, %v371_v11 }
  0xd8   : > { %v669_v13 = vpop.f32.mrf.mxu0 }
  0xd9   : > { %v376_v15 = vmax.f32 %v372_v12, 0.0 }
  0xdb   : > { %v377_v16 = vpack.c.bf16 %v376_v15, %v375_v14 }
  0xdd   : > { %673 = vmatmul.mubr.msk.bf16.vlgmr.msra.gmra.mxu1 %vm393_vm3, %v377_v16 }
 0x19d   : > { %v431_v26 = vpop.f32.mrf.mxu1 }
 0x19e   : > { %v432_v28 = vadd.f32 %v649_v25, %v431_v26 }
 0x19f   : > { %v674_v27 = vpop.f32.mrf.mxu1 }
 0x1a0   : > { %v438_v32 = vmax.f32 %v432_v28, 0.0 }
 0x1a1   : > { %v434_v29 = vpop.f32.mrf.mxu1 }
 0x1a2   : > { %v435_v30 = vadd.f32 %v649_v25, %v434_v29 }
 0x1a3   : > { %v675_v31 = vpop.f32.mrf.mxu1 }
 0x1a4   : > { %v439_v33 = vmax.f32 %v435_v30, 0.0 }
 0x1a6   : > { %v440_v34 = vpack.c.bf16 %v439_v33, %v438_v32 }
 0x1a8   : > { %656 = vmatmul.mubr.msk.bf16.vlgmr.msra.gmra.mxu0 %vm477_vm5, %v440_v34 }
 0x268   : > { %v515_v40 = vpop.f32.mrf.mxu0 }
 0x269   : > { %v516_v43 = vadd.f32 %v515_v40, %v450_v39 }
 0x26a   : > { %v517_v42 = vpop.f32.mrf.mxu0 }
 0x26b   : > { %v518_v45 = vadd.f32 %v517_v42, %v454_v41  ;;  %v524_v48 = vmax.f32 %v516_v43, 0.0 }
 0x26c   : > { %v519_v44 = vpop.f32.mrf.mxu0 }
 0x26d   : > { %v520_v46 = vadd.f32 %v519_v44, %v450_v39  ;;  %v525_v51 = vmax.f32 %v518_v45, 0.0 }
 0x26e   : > { %v521_v47 = vpop.f32.mrf.mxu0 }
 0x26f   : > { %v526_v49 = vmax.f32 %v520_v46, 0.0  ;;  %v522_v50 = vadd.f32 %v521_v47, %v454_v41 }
 0x271   : > { %v529_v52 = vmax.f32 %v524_v48, %v526_v49  ;;  %v527_v53 = vmax.f32 %v522_v50, 0.0 }
 0x273   : > { %v530_v54 = vrot.slane %v529_v52, 4  ;;  %v536_v55 = vmax.f32 %v525_v51, %v527_v53 }
 0x275   : > { %v531_v56 = vmax.f32 %v529_v52, %v530_v54  ;;  %v537_v57 = vrot.slane %v536_v55, 4 }
 0x277   : > { %v532_v60 = vrot.slane %v531_v56, 2  ;;  %v538_v61 = vmax.f32 %v536_v55, %v537_v57 }
 0x279   : > { %v533_v62 = vmax.f32 %v531_v56, %v532_v60  ;;  %v539_v63 = vrot.slane %v538_v61, 2 }
 0x27b   : > { %v534_v1 = vrot.slane %v533_v62, 1  ;;  %v540_v2 = vmax.f32 %v538_v61, %v539_v63 }
 0x27d   : > { %v541_v3 = vrot.slane %v540_v2, 1  ;;  %v535_v5 = vmax.f32 %v533_v62, %v534_v1 }
 0x27f   : > { %v542_v6 = vmax.f32 %v540_v2, %v541_v3 }
 0x281   : > { %v545_v7 = vcombine.low %v535_v5, %v542_v6 }
 0x283   : > { %v552_v8 = vrot.slane %v545_v7, %v551_v4 }
 0x285   : > { %v559_v10 = vrot.slane %v552_v8, %v551_v4 }
 0x287   : > { %v561_v11 = vmax.f32 %v528_v9, %v559_v10 }
 0x289   : > { %566 = vst.msk [vmem:[#allocation2] sm:$0x3] %vm826_vm4, %v561_v11 }
 0x290   : > { %v570_v12 = vld [vmem:[#allocation2] sm:$0x3] }
 0x291   : > { %571 = vst.msk [vmem:[%s304_s11] sm:$0x3] %vm826_vm4, %v570_v12 }
 0x292 PF: > { %s17_s26 = sadd.s32 1, %s734_s26   ;;  %s865_s24 = smov %s730_s25 }
 0x293   : > { %p14_p5 = scmp.ge.s32.totalorder %s17_s26, 4   ;;  %s866_s25 = smov %s868_s27 }
 0x295   :  { %16 = sbr.rel (!%p14_p5) target bundleno = 2 (0x2), region = 86 }

// kernel: basic_pointnet_forward.8
= control target key start
LH: loop header
LB: loop body
LE: loop exit
PB: predicated region body
PF: predicated region fallthrough
CT: control target
= control target key end

     0   :  { %v563_v1 = vmov 0.0   ;;  %vm564_vm0 = vmmov 0   ;;  %vm373_vm1 = vcmask 523264   ;;  %vm425_vm2 = vcmask 123904   ;;  %s726_s1 = inlined_call_operand.vmem [shape: bf16[256,128], index: 1, kind: input, shape index: {}]   ;;  %s727_s0 = inlined_call_operand.vmem [shape: f32[2,256], index: 0, kind: input, shape index: {}]   ;;  %s728_s3 = inlined_call_operand.vmem [shape: bf16[128,64], index: 3, kind: input, shape index: {}]   ;;  %s729_s5 = inlined_call_operand.vmem [shape: bf16[64,16], index: 5, kind: input, shape index: {}]   ;;  %s730_s2 = inlined_call_operand.vmem [shape: f32[1,128], index: 2, kind: input, shape index: {}]   ;;  %s731_s4 = inlined_call_operand.vmem [shape: f32[1,64], index: 4, kind: input, shape index: {}]   ;;  %s732_s6 = inlined_call_operand.vmem [shape: f32[1,16], index: 6, kind: input, shape index: {}]   ;;  %s733_s7 = inlined_call_operand.vmem [shape: f32[1,16], index: 7, kind: input, shape index: {}]   ;;  %s734_s8 = inlined_call_operand.vmem [shape: f32[2,16], index: 8, kind: output, shape index: {}]  }
   0x1   :  { %v535_v0 = vld [vmem:[%s726_s1 + $0x78] sm:$0xff]   ;;  %501 = vmatprep.subr.bf16.mxu1 %v563_v1  ;;  %v537_v3 = vld [vmem:[%s726_s1 + $0x70] sm:$0xff]   ;;  %v539_v5 = vld [vmem:[%s726_s1 + $0x68] sm:$0xff]   ;;  %517 = vmatprep.mubr.msk.bf16.mxu1 %vm564_vm0, %v563_v1 }
   0x2   :  { %v536_v2 = vld [vmem:[%s726_s1 + $0x38] sm:$0xff]   ;;  %465 = vmatprep.subr.bf16.mxu0 %v535_v0  ;;  %v538_v4 = vld [vmem:[%s726_s1 + $0x30] sm:$0xff]   ;;  %v540_v6 = vld [vmem:[%s726_s1 + $0x28] sm:$0xff]  }
   0x3   :  { %466 = vmatpush3.bf16.msra.mxu0 %v536_v2  ;;  %v541_v7 = vld [vmem:[%s726_s1 + $0x60] sm:$0xff]   ;;  %v543_v9 = vld [vmem:[%s726_s1 + $0x58] sm:$0xff]   ;;  %v545_v11 = vld [vmem:[%s726_s1 + $0x50] sm:$0xff]  }
   0x4   :  { %467 = vmatprep.subr.bf16.mxu0 %v537_v3  ;;  %v542_v8 = vld [vmem:[%s726_s1 + $0x20] sm:$0xff]   ;;  %v544_v10 = vld [vmem:[%s726_s1 + $0x18] sm:$0xff]   ;;  %v546_v15 = vld [vmem:[%s726_s1 + $0x10] sm:$0xff]  }
   0x5   :  { %v431_v12 = vld.sshfl [vmem:[%s727_s0] sm:$0x33 pattern:$0x76325410]  ;;  %v551_v14 = vld [vmem:[%s728_s3 + $0x38] sm:$0xff]   ;;  %v552_v17 = vld [vmem:[%s728_s3 + $0x30] sm:$0xff]  }
   0x6   :  { %v39_v13 = vcombine.high %v431_v12, %v431_v12  ;;  %502 = vmatpush3.bf16.msra.mxu1 %v551_v14  ;;  %v547_v18 = vld [vmem:[%s726_s1 + $0x48] sm:$0xff]   ;;  %v549_v21 = vld [vmem:[%s726_s1 + $0x40] sm:$0xff]   ;;  %v42_v24 = vpack.c.bf16 %v431_v12, %v431_v12  ;;  %v555_v25 = vld [vmem:[%s728_s3 + $0x18] sm:$0xff]  }
   0x7   :  { %468 = vmatpush3.bf16.msra.mxu0 %v538_v4  ;;  %503 = vmatprep.subr.bf16.mxu1 %v563_v1  ;;  %v548_v19 = vld [vmem:[%s726_s1 + $0x8] sm:$0xff]   ;;  %v550_v22 = vld [vmem:[%s726_s1] sm:$0xff]   ;;  %v556_v26 = vld [vmem:[%s728_s3 + $0x10] sm:$0xff]  }
   0x8   :  { %469 = vmatprep.subr.bf16.mxu0 %v539_v5  ;;  %v43_v16 = vpack.c.bf16 %v39_v13, %v39_v13  ;;  %v553_v20 = vld [vmem:[%s728_s3 + $0x28] sm:$0xff]   ;;  %v554_v23 = vld [vmem:[%s728_s3 + $0x20] sm:$0xff]   ;;  %v559_v29 = vld [vmem:[%s729_s5 + $0x18] sm:$0xff]  }
   0x9   :  { %v557_v27 = vld [vmem:[%s728_s3 + $0x8] sm:$0xff]   ;;  %v558_v28 = vld [vmem:[%s728_s3] sm:$0xff]   ;;  %v560_v30 = vld [vmem:[%s729_s5 + $0x10] sm:$0xff]  }
   0xa   :  { %211 = vmatprep.mubr.bf16.mxu0 %v43_v16  ;;  %504 = vmatpush3.bf16.msra.mxu1 %v552_v17  ;;  %v432_v32 = vld [vmem:[%s730_s2] ss:$0 sm:$0xff]  ;;  %v561_v40 = vld [vmem:[%s729_s5 + $0x8] sm:$0xff]  }
   0xb   :  { %470 = vmatpush3.bf16.msra.mxu0 %v540_v6  ;;  %505 = vmatprep.subr.bf16.mxu1 %v563_v1  ;;  %v562_v41 = vld [vmem:[%s729_s5] sm:$0xff]  }
   0xc   :  { %471 = vmatprep.subr.bf16.mxu0 %v541_v7  ;;  %v449_v42 = vld [vmem:[%s731_s4] ss:$0 sm:$0xff] }
   0xd   :  { %v458_v50 = vld [vmem:[%s732_s6] ss:$0 sm:$0xff] }
   0xe   :  { %506 = vmatpush3.bf16.msra.mxu1 %v553_v20  ;;  %v464_v52 = vld [vmem:[%s733_s7] ss:$0 sm:$0xff] }
   0xf   :  { %472 = vmatpush3.bf16.msra.mxu0 %v542_v8  ;;  %507 = vmatprep.subr.bf16.mxu1 %v563_v1 }
  0x10   :  { %473 = vmatprep.subr.bf16.mxu0 %v543_v9 }
  0x12   :  { %508 = vmatpush3.bf16.msra.mxu1 %v554_v23 }
  0x13   :  { %474 = vmatpush3.bf16.msra.mxu0 %v544_v10  ;;  %509 = vmatprep.subr.bf16.mxu1 %v563_v1 }
  0x14   :  { %475 = vmatprep.subr.bf16.mxu0 %v545_v11 }
  0x16   :  { %510 = vmatpush3.bf16.msra.mxu1 %v555_v25 }
  0x17   :  { %476 = vmatpush3.bf16.msra.mxu0 %v546_v15  ;;  %511 = vmatprep.subr.bf16.mxu1 %v563_v1 }
  0x18   :  { %477 = vmatprep.subr.bf16.mxu0 %v547_v18 }
  0x1a   :  { %512 = vmatpush3.bf16.msra.mxu1 %v556_v26 }
  0x1b   :  { %478 = vmatpush3.bf16.msra.mxu0 %v548_v19  ;;  %513 = vmatprep.subr.bf16.mxu1 %v563_v1 }
  0x1c   :  { %479 = vmatprep.subr.bf16.mxu0 %v549_v21 }
  0x1e   :  { %514 = vmatpush3.bf16.msra.mxu1 %v557_v27 }
  0x1f   :  { %480 = vmatpush3.bf16.msra.mxu0 %v550_v22  ;;  %515 = vmatprep.subr.bf16.mxu1 %v563_v1 }
  0x20   :  { %521 = vmatprep.subr.bf16.mxu0 %v563_v1 }
  0x22   :  { %212 = vmatmul.mubr.bf16.vlgmr.msra.gmra.mxu0 %v42_v24  ;;  %516 = vmatpush3.bf16.msra.mxu1 %v558_v28 }
  0x23   :  { %529 = vmatprep.mubr.msk.bf16.mxu0 %vm564_vm0, %v563_v1  ;;  %522 = vmatpush3.bf16.msra.mxu0 %v559_v29 }
  0x24   :  { %523 = vmatprep.subr.bf16.mxu0 %v563_v1 }
  0x27   :  { %524 = vmatpush3.bf16.msra.mxu0 %v560_v30 }
  0x28   :  { %525 = vmatprep.subr.bf16.mxu0 %v563_v1 }
  0x2b   :  { %526 = vmatpush3.bf16.msra.mxu0 %v561_v40 }
  0x2c   :  { %527 = vmatprep.subr.bf16.mxu0 %v563_v1 }
  0x2f   :  { %528 = vmatpush3.bf16.msra.mxu0 %v562_v41 }
  0xe2   :  { %v481_v31 = vpop.f32.mrf.mxu0 }
  0xe4   :  { %v482_v33 = vpop.f32.mrf.mxu0 }
  0xe5   :  { %v483_v34 = vadd.f32 %v482_v33, %v481_v31 }
  0xe6   :  { %v484_v35 = vpop.f32.mrf.mxu0 }
  0xe7   :  { %v214_v36 = vadd.f32 %v483_v34, %v432_v32 }
  0xe8   :  { %v485_v37 = vpop.f32.mrf.mxu0 }
  0xe9   :  { %v219_v38 = vmax.f32 %v214_v36, 0.0 }
  0xeb   :  { %v220_v39 = vpack.c.bf16 %v219_v38, %v219_v38 }
  0xed   :  { %518 = vmatmul.mubr.bf16.vlgmr.msra.gmra.mxu1 %v220_v39 }
 0x1ad   :  { %v326_v43 = vpop.f32.mrf.mxu1 }
 0x1ae   :  { %v327_v44 = vadd.f32 %v449_v42, %v326_v43 }
 0x1af   :  { %v519_v45 = vpop.f32.mrf.mxu1 }
 0x1b0   :  { %v332_v46 = vmax.f32 %v327_v44, 0.0 }
 0x1b1   :  { %v329_v47 = vpop.f32.mrf.mxu1 }
 0x1b2   :  { %v333_v48 = vpack.c.bf16 %v332_v46, %v332_v46 }
 0x1b3   :  { %v520_v49 = vpop.f32.mrf.mxu1 }
 0x1b4   :  { %530 = vmatmul.mubr.msk.bf16.vlgmr.msra.gmra.mxu0 %vm373_vm1, %v333_v48 }
 0x274   :  { %v411_v51 = vpop.f32.mrf.mxu0 }
 0x275   :  { %v412_v53 = vadd.f32 %v458_v50, %v411_v51 }
 0x276   :  { %v531_v54 = vpop.f32.mrf.mxu0 }
 0x277   :  { %v424_v55 = vadd.f32 %v464_v52, %v412_v53 }
 0x278   :  { %v414_v56 = vpop.f32.mrf.mxu0 }
 0x279   :  { %426 = vst.msk [vmem:[%s734_s8] sm:$0x3] %vm425_vm2, %v424_v55 }
 0x27a   :  { %v532_v57 = vpop.f32.mrf.mxu0 }

// kernel: basic_pointnet_forward.10
= control target key start
LH: loop header
LB: loop body
LE: loop exit
PB: predicated region body
PF: predicated region fallthrough
CT: control target
= control target key end

     0   :  { %s791_s24 = smov 0   ;;  %s793_s25 = smov 0   ;;  %s865_s0 = inlined_call_operand.vmem [shape: bf16[2,16,16], index: 0, kind: input, shape index: {}]   ;;  %s866_s1 = inlined_call_operand.vmem [shape: bf16[16,16], index: 1, kind: input, shape index: {}]   ;;  %s867_s2 = inlined_call_operand.vmem [shape: f32[1,16], index: 2, kind: input, shape index: {}]   ;;  %s868_s3 = inlined_call_operand.vmem [shape: bf16[16,32], index: 3, kind: input, shape index: {}]   ;;  %s869_s4 = inlined_call_operand.vmem [shape: f32[1,32], index: 4, kind: input, shape index: {}]   ;;  %s870_s5 = inlined_call_operand.vmem [shape: bf16[32,256], index: 5, kind: input, shape index: {}]   ;;  %s871_s6 = inlined_call_operand.vmem [shape: f32[1,256], index: 6, kind: input, shape index: {}]   ;;  %s872_s7 = inlined_call_operand.vmem [shape: f32[2,1,256], index: 7, kind: output, shape index: {}]  }
   0x1   :  { %s795_s26 = smov 0  }
   0x2 LB: > { %s29_s27 = sadd.s32 1, %s740_s25  ;;  %p649_p0 = scmp.ge.s32.totalorder %s744_s26, 1  ;;  %s744_s26 = sphi %s795_s26, %s17_s26   ;;  %s740_s25 = sphi %s793_s25, %s876_s25   ;;  %s736_s24 = sphi %s791_s24, %s875_s24  }
   0x3   : > { %p31_p1 = scmp.ge.s32.totalorder %s29_s27, 2  ;;  %p256_p2 = scmp.lt.s32.totalorder %s744_s26, 3 }
   0x5   : > { %s878_s27 = smov (%p31_p1, %s29_s27), 0  ;;  %p257_p3 = pnand %p649_p0, %p256_p2 }
   0x6   : > { %p292_p4 = scmp.lt.s32.totalorder (!%p257_p3), %s736_s24, 1 }
   0x7   : > { %260 = sbr.rel (%p257_p3) target bundleno = 657 (0x291), region = 48 }
   0xc   : > { %v713_v0 = vld [vmem:[%s866_s1] sm:$0xff]   ;;  %v746_v1 = vmov 0.0   ;;  %vm747_vm0 = vmmov 0   ;;  %s880_s24 = smov (!%p292_p4, %s736_s24), 1  ;;  %vm337_vm1 = vcmask 130048   ;;  %v748_v18 = vmov 0  }
   0xd   : > { %672 = vmatprep.subr.bf16.mxu0 %v746_v1  ;;  %678 = vmatprep.subr.bf16.mxu1 %v746_v1  ;;  %s667_s30 = sshll.u32 %s880_s24, 3  ;;  %v715_v3 = vld [vmem:[%s868_s3] sm:$0xff]   ;;  %v718_v14 = vld [vmem:[%s870_s5 + $0x14] ss:$8 sps:$4 sm:$0xff]   ;;  %v716_v15 = vld [vmem:[%s870_s5 + $0x10] ss:$8 sps:$4 sm:$0xff]   ;;  %v310_v19 = vlaneseq }
   0xe   : > { %673 = vmatpush3.bf16.msra.mxu0 %v713_v0  ;;  %674 = vmatprep.mubr.msk.bf16.mxu0 %vm747_vm0, %v746_v1  ;;  %s299_s10 = scalar_lea.vmem %s865_s0, %s667_s30  ;;  %v653_v4 = vld [vmem:[%s867_s2] ss:$0 sm:$0xff]  ;;  %v721_v16 = vld [vmem:[%s870_s5 + $0x4] ss:$8 sps:$4 sm:$0xff]   ;;  %v749_v21 = vmov -inf   ;;  %vm483_vm3 = vcmask 261120  }
   0xf   : > { %680 = vmatprep.mubr.msk.bf16.mxu1 %vm747_vm0, %v746_v1  ;;  %v714_v2 = vld [vmem:[%s299_s10] sm:$0xff]   ;;  %679 = vmatpush3.bf16.msra.mxu1 %v715_v3  ;;  %vm836_vm2 = vcmp.lt.s32.totalorder %v310_v19, 256  ;;  %v454_v32 = vshrl.u32 %v310_v19, 7  ;;  %v750_v55 = vmov 1966171168   ;;  %s652_s8 = sshll.u32 %s880_s24, 1 }
  0x10   : > { %499 = vmatprep.subr.bf16.mxu0 %v718_v14  ;;  %v719_v17 = vld [vmem:[%s870_s5] ss:$8 sps:$4 sm:$0xff]   ;;  %314 = vst.msk [vmem:[#allocation2] sm:$0x3] %vm836_vm2, %v749_v21  ;;  %v553_v56 = vunpack.c.l.s4 %v750_v55  ;;  %s304_s11 = scalar_lea.vmem %s872_s7, %s652_s8 }
  0x11   : > { %675 = vmatmul.mubr.msk.bf16.vlgmr.msra.gmra.mxu0 %vm337_vm1, %v714_v2  ;;  %v657_v22 = vld [vmem:[%s869_s4] ss:$0 sm:$0xff]  ;;  %v455_v33 = vsub.s32 0, %v454_v32  ;;  %v459_v35 = vsub.s32 1, %v454_v32 }
  0x12   : > { %500 = vmatpush1.bf16.msra.mxu0 %v716_v15  ;;  %519 = vmatprep.mubr.bf16.mxu0 %v748_v18  ;;  %v451_v34 = vld [vmem:[%s871_s6] sm:$0x3]  ;;  %v554_v61 = vunpack.c.0.s8 %v553_v56 }
  0x13   : > { %501 = vmatprep.subr.bf16.mxu0 %v721_v16  ;;  %v456_v36 = vrot.slane %v451_v34, %v455_v33  ;;  %v460_v38 = vrot.slane %v451_v34, %v459_v35 }
  0x14   : > { %v557_v1 = vsub.s32 %v554_v61, %v454_v32 }
  0x16   : > { %502 = vmatpush1.bf16.msra.mxu0 %v719_v17 }
  0xd1   : > { %v375_v5 = vpop.f32.mrf.mxu0 }
  0xd2   : > { %v376_v7 = vadd.f32 %v653_v4, %v375_v5 }
  0xd3   : > { %v676_v6 = vpop.f32.mrf.mxu0 }
  0xd4   : > { %v382_v11 = vmax.f32 %v376_v7, 0.0  ;;  %v534_v6 = vld [vmem:[#allocation2] sm:$0x3] }
  0xd5   : > { %v378_v8 = vpop.f32.mrf.mxu0 }
  0xd6   : > { %v379_v9 = vadd.f32 %v653_v4, %v378_v8 }
  0xd7   : > { %v677_v10 = vpop.f32.mrf.mxu0 }
  0xd8   : > { %v383_v12 = vmax.f32 %v379_v9, 0.0 }
  0xda   : > { %v384_v13 = vpack.c.bf16 %v383_v12, %v382_v11 }
  0xdc   : > { %681 = vmatmul.mubr.msk.bf16.vlgmr.msra.gmra.mxu1 %vm337_vm1, %v384_v13 }
 0x19c   : > { %v437_v23 = vpop.f32.mrf.mxu1 }
 0x19d   : > { %v438_v25 = vadd.f32 %v657_v22, %v437_v23 }
 0x19e   : > { %v682_v24 = vpop.f32.mrf.mxu1 }
 0x19f   : > { %v444_v29 = vmax.f32 %v438_v25, 0.0 }
 0x1a0   : > { %v440_v26 = vpop.f32.mrf.mxu1 }
 0x1a1   : > { %v441_v27 = vadd.f32 %v657_v22, %v440_v26 }
 0x1a2   : > { %v683_v28 = vpop.f32.mrf.mxu1 }
 0x1a3   : > { %v445_v30 = vmax.f32 %v441_v27, 0.0 }
 0x1a5   : > { %v446_v31 = vpack.c.bf16 %v445_v30, %v444_v29 }
 0x1a7   : > { %664 = vmatmul.mubr.msk.bf16.vlgmr.msra.gmra.mxu0 %vm483_vm3, %v446_v31 }
 0x267   : > { %v521_v37 = vpop.f32.mrf.mxu0 }
 0x268   : > { %v522_v40 = vadd.f32 %v521_v37, %v456_v36 }
 0x269   : > { %v523_v39 = vpop.f32.mrf.mxu0 }
 0x26a   : > { %v524_v42 = vadd.f32 %v523_v39, %v460_v38  ;;  %v530_v45 = vmax.f32 %v522_v40, 0.0 }
 0x26b   : > { %v525_v41 = vpop.f32.mrf.mxu0 }
 0x26c   : > { %v526_v43 = vadd.f32 %v525_v41, %v456_v36  ;;  %v531_v48 = vmax.f32 %v524_v42, 0.0 }
 0x26d   : > { %v527_v44 = vpop.f32.mrf.mxu0 }
 0x26e   : > { %v532_v46 = vmax.f32 %v526_v43, 0.0  ;;  %v528_v47 = vadd.f32 %v527_v44, %v460_v38 }
 0x270   : > { %v535_v49 = vmax.f32 %v530_v45, %v532_v46  ;;  %v533_v50 = vmax.f32 %v528_v47, 0.0 }
 0x272   : > { %v536_v51 = vrot.slane %v535_v49, 4  ;;  %v542_v52 = vmax.f32 %v531_v48, %v533_v50 }
 0x274   : > { %v537_v53 = vmax.f32 %v535_v49, %v536_v51  ;;  %v543_v54 = vrot.slane %v542_v52, 4 }
 0x276   : > { %v538_v57 = vrot.slane %v537_v53, 2  ;;  %v544_v58 = vmax.f32 %v542_v52, %v543_v54 }
 0x278   : > { %v539_v59 = vmax.f32 %v537_v53, %v538_v57  ;;  %v545_v60 = vrot.slane %v544_v58, 2 }
 0x27a   : > { %v540_v62 = vrot.slane %v539_v59, 1  ;;  %v546_v63 = vmax.f32 %v544_v58, %v545_v60 }
 0x27c   : > { %v547_v0 = vrot.slane %v546_v63, 1  ;;  %v541_v2 = vmax.f32 %v539_v59, %v540_v62 }
 0x27e   : > { %v548_v3 = vmax.f32 %v546_v63, %v547_v0 }
 0x280   : > { %v551_v4 = vcombine.low %v541_v2, %v548_v3 }
 0x282   : > { %v558_v5 = vrot.slane %v551_v4, %v557_v1 }
 0x284   : > { %v565_v7 = vrot.slane %v558_v5, %v557_v1 }
 0x286   : > { %v567_v8 = vmax.f32 %v534_v6, %v565_v7 }
 0x288   : > { %572 = vst.msk [vmem:[#allocation2] sm:$0x3] %vm836_vm2, %v567_v8 }
 0x28f   : > { %v576_v9 = vld [vmem:[#allocation2] sm:$0x3] }
 0x290   : > { %577 = vst.msk [vmem:[%s304_s11] sm:$0x3] %vm836_vm2, %v576_v9 }
 0x291 PF: > { %s17_s26 = sadd.s32 1, %s744_s26   ;;  %s875_s24 = smov %s740_s25 }
 0x292   : > { %p14_p5 = scmp.ge.s32.totalorder %s17_s26, 4   ;;  %s876_s25 = smov %s878_s27 }
 0x294   :  { %16 = sbr.rel (!%p14_p5) target bundleno = 2 (0x2), region = 86 }

// kernel: basic_pointnet_forward.11
= control target key start
LH: loop header
LB: loop body
LE: loop exit
PB: predicated region body
PF: predicated region fallthrough
CT: control target
= control target key end

     0   :  { %v596_v1 = vmov 0.0   ;;  %vm597_vm0 = vmmov 0   ;;  %v598_v46 = vmov 0   ;;  %vm394_vm1 = vcmask 523264   ;;  %s767_s1 = inlined_call_operand.vmem [shape: bf16[256,128], index: 1, kind: input, shape index: {}]   ;;  %s768_s0 = inlined_call_operand.vmem [shape: f32[2,256], index: 0, kind: input, shape index: {}]   ;;  %s769_s3 = inlined_call_operand.vmem [shape: bf16[128,64], index: 3, kind: input, shape index: {}]   ;;  %s770_s5 = inlined_call_operand.vmem [shape: bf16[64,256], index: 5, kind: input, shape index: {}]   ;;  %s771_s2 = inlined_call_operand.vmem [shape: f32[1,128], index: 2, kind: input, shape index: {}]   ;;  %s772_s4 = inlined_call_operand.vmem [shape: f32[1,64], index: 4, kind: input, shape index: {}]   ;;  %s773_s6 = inlined_call_operand.vmem [shape: f32[1,256], index: 6, kind: input, shape index: {}]   ;;  %s774_s7 = inlined_call_operand.vmem [shape: f32[1,256], index: 7, kind: input, shape index: {}]   ;;  %s775_s8 = inlined_call_operand.vmem [shape: f32[2,256], index: 8, kind: output, shape index: {}]  }
   0x1   :  { %v560_v0 = vld [vmem:[%s767_s1 + $0x78] sm:$0xff]   ;;  %537 = vmatprep.subr.bf16.mxu1 %v596_v1  ;;  %v562_v3 = vld [vmem:[%s767_s1 + $0x70] sm:$0xff]   ;;  %v564_v5 = vld [vmem:[%s767_s1 + $0x68] sm:$0xff]   ;;  %553 = vmatprep.mubr.msk.bf16.mxu1 %vm597_vm0, %v596_v1  ;;  %v344_v55 = vlaneseq }
   0x2   :  { %v561_v2 = vld [vmem:[%s767_s1 + $0x38] sm:$0xff]   ;;  %506 = vmatprep.subr.bf16.mxu0 %v560_v0  ;;  %v563_v4 = vld [vmem:[%s767_s1 + $0x30] sm:$0xff]   ;;  %v565_v6 = vld [vmem:[%s767_s1 + $0x28] sm:$0xff]  }
   0x3   :  { %507 = vmatpush3.bf16.msra.mxu0 %v561_v2  ;;  %v566_v7 = vld [vmem:[%s767_s1 + $0x60] sm:$0xff]   ;;  %v568_v9 = vld [vmem:[%s767_s1 + $0x58] sm:$0xff]   ;;  %v570_v11 = vld [vmem:[%s767_s1 + $0x50] sm:$0xff]   ;;  %v345_v56 = vshrl.u32 %v344_v55, 7 }
   0x4   :  { %508 = vmatprep.subr.bf16.mxu0 %v562_v3  ;;  %v567_v8 = vld [vmem:[%s767_s1 + $0x20] sm:$0xff]   ;;  %v569_v10 = vld [vmem:[%s767_s1 + $0x18] sm:$0xff]   ;;  %v571_v15 = vld [vmem:[%s767_s1 + $0x10] sm:$0xff]  }
   0x5   :  { %v469_v12 = vld.sshfl [vmem:[%s768_s0] sm:$0x33 pattern:$0x76325410]  ;;  %v576_v14 = vld [vmem:[%s769_s3 + $0x38] sm:$0xff]   ;;  %v577_v17 = vld [vmem:[%s769_s3 + $0x30] sm:$0xff]  }
   0x6   :  { %v39_v13 = vcombine.high %v469_v12, %v469_v12  ;;  %538 = vmatpush3.bf16.msra.mxu1 %v576_v14  ;;  %v572_v18 = vld [vmem:[%s767_s1 + $0x48] sm:$0xff]   ;;  %v574_v21 = vld [vmem:[%s767_s1 + $0x40] sm:$0xff]   ;;  %v42_v24 = vpack.c.bf16 %v469_v12, %v469_v12  ;;  %v580_v25 = vld [vmem:[%s769_s3 + $0x18] sm:$0xff]   ;;  %v346_v57 = vsub.s32 0, %v345_v56  ;;  %v350_v59 = vsub.s32 1, %v345_v56 }
   0x7   :  { %509 = vmatpush3.bf16.msra.mxu0 %v563_v4  ;;  %539 = vmatprep.subr.bf16.mxu1 %v596_v1  ;;  %v573_v19 = vld [vmem:[%s767_s1 + $0x8] sm:$0xff]   ;;  %v575_v22 = vld [vmem:[%s767_s1] sm:$0xff]   ;;  %v581_v26 = vld [vmem:[%s769_s3 + $0x10] sm:$0xff]  }
   0x8   :  { %510 = vmatprep.subr.bf16.mxu0 %v564_v5  ;;  %v43_v16 = vpack.c.bf16 %v39_v13, %v39_v13  ;;  %v578_v20 = vld [vmem:[%s769_s3 + $0x28] sm:$0xff]   ;;  %v579_v23 = vld [vmem:[%s769_s3 + $0x20] sm:$0xff]   ;;  %v584_v29 = vld [vmem:[%s770_s5 + $0x30] ss:$8 sps:$4 sm:$0xff]  }
   0x9   :  { %v582_v27 = vld [vmem:[%s769_s3 + $0x8] sm:$0xff]   ;;  %v583_v28 = vld [vmem:[%s769_s3] sm:$0xff]   ;;  %v586_v30 = vld [vmem:[%s770_s5 + $0x34] ss:$8 sps:$4 sm:$0xff]  }
   0xa   :  { %211 = vmatprep.mubr.bf16.mxu0 %v43_v16  ;;  %540 = vmatpush3.bf16.msra.mxu1 %v577_v17  ;;  %v589_v31 = vld [vmem:[%s770_s5 + $0x24] ss:$8 sps:$4 sm:$0xff]   ;;  %v587_v32 = vld [vmem:[%s770_s5 + $0x20] ss:$8 sps:$4 sm:$0xff]   ;;  %v592_v33 = vld [vmem:[%s770_s5 + $0x14] ss:$8 sps:$4 sm:$0xff]  }
   0xb   :  { %511 = vmatpush3.bf16.msra.mxu0 %v565_v6  ;;  %541 = vmatprep.subr.bf16.mxu1 %v596_v1  ;;  %v590_v34 = vld [vmem:[%s770_s5 + $0x10] ss:$8 sps:$4 sm:$0xff]   ;;  %v470_v36 = vld [vmem:[%s771_s2] ss:$0 sm:$0xff]  ;;  %v595_v44 = vld [vmem:[%s770_s5 + $0x4] ss:$8 sps:$4 sm:$0xff]  }
   0xc   :  { %512 = vmatprep.subr.bf16.mxu0 %v566_v7  ;;  %v593_v45 = vld [vmem:[%s770_s5] ss:$8 sps:$4 sm:$0xff]  }
   0xd   :  { %v487_v47 = vld [vmem:[%s772_s4] ss:$0 sm:$0xff] }
   0xe   :  { %542 = vmatpush3.bf16.msra.mxu1 %v578_v20  ;;  %v342_v58 = vld [vmem:[%s773_s6] sm:$0x3] }
   0xf   :  { %513 = vmatpush3.bf16.msra.mxu0 %v567_v8  ;;  %543 = vmatprep.subr.bf16.mxu1 %v596_v1  ;;  %v347_v60 = vrot.slane %v342_v58, %v346_v57  ;;  %v439_v61 = vld [vmem:[%s774_s7] sm:$0x3]  ;;  %v351_v62 = vrot.slane %v342_v58, %v350_v59 }
  0x10   :  { %514 = vmatprep.subr.bf16.mxu0 %v568_v9  ;;  %v448_v2 = vrot.slane %v439_v61, %v350_v59 }
  0x12   :  { %544 = vmatpush3.bf16.msra.mxu1 %v579_v23 }
  0x13   :  { %515 = vmatpush3.bf16.msra.mxu0 %v569_v10  ;;  %545 = vmatprep.subr.bf16.mxu1 %v596_v1 }
  0x14   :  { %516 = vmatprep.subr.bf16.mxu0 %v570_v11 }
  0x16   :  { %546 = vmatpush3.bf16.msra.mxu1 %v580_v25 }
  0x17   :  { %517 = vmatpush3.bf16.msra.mxu0 %v571_v15  ;;  %547 = vmatprep.subr.bf16.mxu1 %v596_v1 }
  0x18   :  { %518 = vmatprep.subr.bf16.mxu0 %v572_v18 }
  0x1a   :  { %548 = vmatpush3.bf16.msra.mxu1 %v581_v26 }
  0x1b   :  { %519 = vmatpush3.bf16.msra.mxu0 %v573_v19  ;;  %549 = vmatprep.subr.bf16.mxu1 %v596_v1 }
  0x1c   :  { %520 = vmatprep.subr.bf16.mxu0 %v574_v21 }
  0x1e   :  { %550 = vmatpush3.bf16.msra.mxu1 %v582_v27 }
  0x1f   :  { %521 = vmatpush3.bf16.msra.mxu0 %v575_v22  ;;  %551 = vmatprep.subr.bf16.mxu1 %v596_v1  ;;  %v444_v1 = vrot.slane %v439_v61, %v346_v57 }
  0x20   :  { %406 = vmatprep.subr.bf16.mxu0 %v586_v30 }
  0x22   :  { %212 = vmatmul.mubr.bf16.vlgmr.msra.gmra.mxu0 %v42_v24  ;;  %552 = vmatpush3.bf16.msra.mxu1 %v583_v28 }
  0x23   :  { %407 = vmatpush1.bf16.msra.mxu0 %v584_v29  ;;  %430 = vmatprep.mubr.bf16.mxu0 %v598_v46 }
  0x24   :  { %408 = vmatprep.subr.bf16.mxu0 %v589_v31 }
  0x27   :  { %409 = vmatpush1.bf16.msra.mxu0 %v587_v32 }
  0x28   :  { %410 = vmatprep.subr.bf16.mxu0 %v592_v33 }
  0x2b   :  { %411 = vmatpush1.bf16.msra.mxu0 %v590_v34 }
  0x2c   :  { %412 = vmatprep.subr.bf16.mxu0 %v595_v44 }
  0x2f   :  { %413 = vmatpush1.bf16.msra.mxu0 %v593_v45 }
  0xe2   :  { %v522_v35 = vpop.f32.mrf.mxu0 }
  0xe4   :  { %v523_v37 = vpop.f32.mrf.mxu0 }
  0xe5   :  { %v524_v38 = vadd.f32 %v523_v37, %v522_v35 }
  0xe6   :  { %v525_v39 = vpop.f32.mrf.mxu0 }
  0xe7   :  { %v214_v40 = vadd.f32 %v524_v38, %v470_v36 }
  0xe8   :  { %v526_v41 = vpop.f32.mrf.mxu0 }
  0xe9   :  { %v219_v42 = vmax.f32 %v214_v40, 0.0 }
  0xeb   :  { %v220_v43 = vpack.c.bf16 %v219_v42, %v219_v42 }
  0xed   :  { %554 = vmatmul.mubr.bf16.vlgmr.msra.gmra.mxu1 %v220_v43 }
 0x1ad   :  { %v326_v48 = vpop.f32.mrf.mxu1 }
 0x1ae   :  { %v327_v49 = vadd.f32 %v487_v47, %v326_v48 }
 0x1af   :  { %v555_v50 = vpop.f32.mrf.mxu1 }
 0x1b0   :  { %v332_v51 = vmax.f32 %v327_v49, 0.0 }
 0x1b1   :  { %v329_v52 = vpop.f32.mrf.mxu1 }
 0x1b2   :  { %v333_v53 = vpack.c.bf16 %v332_v51, %v332_v51 }
 0x1b3   :  { %v556_v54 = vpop.f32.mrf.mxu1 }
 0x1b4   :  { %504 = vmatmul.mubr.msk.bf16.vlgmr.msra.gmra.mxu0 %vm394_vm1, %v333_v53 }
 0x274   :  { %v432_v63 = vpop.f32.mrf.mxu0 }
 0x275   :  { %v433_v0 = vadd.f32 %v432_v63, %v347_v60 }
 0x276   :  { %v434_v3 = vpop.f32.mrf.mxu0 }
 0x277   :  { %v435_v4 = vadd.f32 %v434_v3, %v351_v62  ;;  %v451_v6 = vadd.f32 %v444_v1, %v433_v0 }
 0x278   :  { %v436_v5 = vpop.f32.mrf.mxu0 }
 0x279   :  { %v452_v7 = vadd.f32 %v448_v2, %v435_v4 }
 0x27a   :  { %v437_v8 = vpop.f32.mrf.mxu0 }
 0x27b   :  { %v455_v9 = vcombine.low %v451_v6, %v452_v7 }
 0x27d   :  { %505 = vst.sshfl [vmem:[%s775_s8] sm:$0x33 pattern:$0x76325410] %v455_v9 }

// kernel: basic_pointnet_forward.12
= control target key start
LH: loop header
LB: loop body
LE: loop exit
PB: predicated region body
PF: predicated region fallthrough
CT: control target
= control target key end

     0   :  { %s684_s18 = smov 0   ;;  %s686_s19 = smov 0   ;;  %s752_s0 = inlined_call_operand.vmem [shape: bf16[2,16,16], index: 0, kind: input, shape index: {}]   ;;  %s753_s1 = inlined_call_operand.vmem [shape: bf16[2,16,32], index: 1, kind: input, shape index: {}]   ;;  %s754_s2 = inlined_call_operand.vmem [shape: f32[1,32], index: 2, kind: input, shape index: {}]   ;;  %s755_s3 = inlined_call_operand.vmem [shape: bf16[32,256], index: 3, kind: input, shape index: {}]   ;;  %s756_s4 = inlined_call_operand.vmem [shape: f32[1,256], index: 4, kind: input, shape index: {}]   ;;  %s757_s5 = inlined_call_operand.vmem [shape: f32[2,1,256], index: 5, kind: output, shape index: {}]  }
   0x1   :  { %s688_s20 = smov 0  }
   0x2 LB: > { %s27_s21 = sadd.s32 1, %s643_s19  ;;  %p561_p0 = scmp.ge.s32.totalorder %s647_s20, 1  ;;  %s647_s20 = sphi %s688_s20, %s15_s20   ;;  %s643_s19 = sphi %s686_s19, %s761_s19   ;;  %s639_s18 = sphi %s684_s18, %s760_s18  }
   0x3   : > { %p29_p1 = scmp.ge.s32.totalorder %s27_s21, 2  ;;  %p216_p2 = scmp.lt.s32.totalorder %s647_s20, 3 }
   0x5   : > { %s763_s21 = smov (%p29_p1, %s27_s21), 0  ;;  %p217_p3 = pnand %p561_p0, %p216_p2 }
   0x6   : > { %p253_p4 = scmp.lt.s32.totalorder (!%p217_p3), %s639_s18, 1 }
   0x7   : > { %220 = sbr.rel (%p217_p3) target bundleno = 454 (0x1c6), region = 40 }
   0xc   : > { %v649_v0 = vmov 0.0   ;;  %vm650_vm0 = vmmov 0   ;;  %s765_s18 = smov (!%p253_p4, %s639_s18), 1  ;;  %vm303_vm1 = vcmask 130048   ;;  %v619_v3 = vld [vmem:[%s755_s3 + $0x14] ss:$8 sps:$4 sm:$0xff]   ;;  %v276_v8 = vlaneseq }
   0xd   : > { %582 = vmatprep.subr.bf16.mxu0 %v649_v0  ;;  %584 = vmatprep.mubr.msk.bf16.mxu0 %vm650_vm0, %v649_v0  ;;  %s578_s22 = sshll.u32 %s765_s18, 3  ;;  %v621_v4 = vld [vmem:[%s755_s3 + $0x10] ss:$8 sps:$4 sm:$0xff]   ;;  %v622_v5 = vld [vmem:[%s755_s3 + $0x4] ss:$8 sps:$4 sm:$0xff]   ;;  %v651_v7 = vmov 0  }
   0xe   : > { %s260_s25 = scalar_lea.vmem %s752_s0, %s578_s22  ;;  %s266_s28 = scalar_lea.vmem %s753_s1, %s578_s22  ;;  %403 = vmatprep.subr.bf16.mxu1 %v619_v3  ;;  %v624_v6 = vld [vmem:[%s755_s3] ss:$8 sps:$4 sm:$0xff]   ;;  %423 = vmatprep.mubr.bf16.mxu1 %v651_v7  ;;  %vm723_vm2 = vcmp.lt.s32.totalorder %v276_v8, 256  ;;  %v652_v10 = vmov -inf   ;;  %vm387_vm3 = vcmask 261120   ;;  %v358_v21 = vshrl.u32 %v276_v8, 7 }
   0xf   : > { %v617_v1 = vld [vmem:[%s266_s28] sm:$0xff]   ;;  %404 = vmatpush1.bf16.msra.mxu1 %v621_v4  ;;  %280 = vst.msk [vmem:[#allocation2] sm:$0x3] %vm723_vm2, %v652_v10  ;;  %v653_v40 = vmov 1966171168   ;;  %s566_s16 = sshll.u32 %s765_s18, 1 }
  0x10   : > { %v618_v2 = vld [vmem:[%s260_s25] sm:$0xff]   ;;  %583 = vmatpush3.bf16.msra.mxu0 %v617_v1  ;;  %405 = vmatprep.subr.bf16.mxu1 %v622_v5  ;;  %v359_v22 = vsub.s32 0, %v358_v21  ;;  %v363_v24 = vsub.s32 1, %v358_v21  ;;  %v453_v41 = vunpack.c.l.s4 %v653_v40  ;;  %s270_s23 = scalar_lea.vmem %s757_s5, %s566_s16 }
  0x11   : > { %v567_v11 = vld [vmem:[%s754_s2] ss:$0 sm:$0xff] }
  0x12   : > { %v355_v23 = vld [vmem:[%s756_s4] sm:$0x3]  ;;  %v454_v46 = vunpack.c.0.s8 %v453_v41 }
  0x13   : > { %585 = vmatmul.mubr.msk.bf16.vlgmr.msra.gmra.mxu0 %vm303_vm1, %v618_v2  ;;  %406 = vmatpush1.bf16.msra.mxu1 %v624_v6  ;;  %v360_v26 = vrot.slane %v355_v23, %v359_v22  ;;  %v364_v28 = vrot.slane %v355_v23, %v363_v24 }
  0x14   : > { %v457_v50 = vsub.s32 %v454_v46, %v358_v21 }
  0x16   : > { %v434_v55 = vld [vmem:[#allocation2] sm:$0x3] }
  0xd3   : > { %v341_v12 = vpop.f32.mrf.mxu0 }
  0xd4   : > { %v342_v14 = vadd.f32 %v567_v11, %v341_v12 }
  0xd5   : > { %v586_v13 = vpop.f32.mrf.mxu0 }
  0xd6   : > { %v348_v18 = vmax.f32 %v342_v14, 0.0 }
  0xd7   : > { %v344_v15 = vpop.f32.mrf.mxu0 }
  0xd8   : > { %v345_v16 = vadd.f32 %v567_v11, %v344_v15 }
  0xd9   : > { %v587_v17 = vpop.f32.mrf.mxu0 }
  0xda   : > { %v349_v19 = vmax.f32 %v345_v16, 0.0 }
  0xdc   : > { %v350_v20 = vpack.c.bf16 %v349_v19, %v348_v18 }
  0xde   : > { %575 = vmatmul.mubr.msk.bf16.vlgmr.msra.gmra.mxu1 %vm387_vm3, %v350_v20 }
 0x19e   : > { %v425_v25 = vpop.f32.mrf.mxu1 }
 0x19f   : > { %v426_v30 = vadd.f32 %v425_v25, %v360_v26 }
 0x1a0   : > { %v427_v27 = vpop.f32.mrf.mxu1 }
 0x1a1   : > { %v428_v33 = vadd.f32 %v427_v27, %v364_v28 }
 0x1a2   : > { %v429_v29 = vpop.f32.mrf.mxu1 }
 0x1a3   : > { %v430_v31 = vadd.f32 %v429_v29, %v360_v26 }
 0x1a4   : > { %v431_v32 = vpop.f32.mrf.mxu1 }
 0x1a5   : > { %v435_v34 = vmax.f32 %v426_v30, %v430_v31  ;;  %v432_v35 = vadd.f32 %v431_v32, %v364_v28 }
 0x1a7   : > { %v436_v36 = vrot.slane %v435_v34, 4  ;;  %v442_v37 = vmax.f32 %v428_v33, %v432_v35 }
 0x1a9   : > { %v437_v38 = vmax.f32 %v435_v34, %v436_v36  ;;  %v443_v39 = vrot.slane %v442_v37, 4 }
 0x1ab   : > { %v438_v42 = vrot.slane %v437_v38, 2  ;;  %v444_v43 = vmax.f32 %v442_v37, %v443_v39 }
 0x1ad   : > { %v439_v44 = vmax.f32 %v437_v38, %v438_v42  ;;  %v445_v45 = vrot.slane %v444_v43, 2 }
 0x1af   : > { %v440_v47 = vrot.slane %v439_v44, 1  ;;  %v446_v48 = vmax.f32 %v444_v43, %v445_v45 }
 0x1b1   : > { %v447_v49 = vrot.slane %v446_v48, 1  ;;  %v441_v51 = vmax.f32 %v439_v44, %v440_v47 }
 0x1b3   : > { %v448_v52 = vmax.f32 %v446_v48, %v447_v49 }
 0x1b5   : > { %v451_v53 = vcombine.low %v441_v51, %v448_v52 }
 0x1b7   : > { %v458_v54 = vrot.slane %v451_v53, %v457_v50 }
 0x1b9   : > { %v465_v56 = vrot.slane %v458_v54, %v457_v50 }
 0x1bb   : > { %v467_v57 = vmax.f32 %v434_v55, %v465_v56 }
 0x1bd   : > { %472 = vst.msk [vmem:[#allocation2] sm:$0x3] %vm723_vm2, %v467_v57 }
 0x1c4   : > { %v476_v58 = vld [vmem:[#allocation2] sm:$0x3] }
 0x1c5   : > { %477 = vst.msk [vmem:[%s270_s23] sm:$0x3] %vm723_vm2, %v476_v58 }
 0x1c6 PF: > { %s15_s20 = sadd.s32 1, %s647_s20   ;;  %s760_s18 = smov %s643_s19 }
 0x1c7   : > { %p12_p5 = scmp.ge.s32.totalorder %s15_s20, 4   ;;  %s761_s19 = smov %s763_s21 }
 0x1c9   :  { %14 = sbr.rel (!%p12_p5) target bundleno = 2 (0x2), region = 81 }

// kernel: basic_pointnet_forward.13
= control target key start
LH: loop header
LB: loop body
LE: loop exit
PB: predicated region body
PF: predicated region fallthrough
CT: control target
= control target key end

     0   :  { %14 = vsyncpa [#allocation3], 0  ;;  %s1377_s0 = inlined_call_operand.vmem [shape: bf16[2,16,16], index: 0, kind: input, shape index: {}]   ;;  %s1378_s1 = inlined_call_operand.vmem [shape: bf16[2,16,128], index: 1, kind: input, shape index: {}]   ;;  %s1379_s2 = inlined_call_operand.vmem [shape: f32[2,1,128], index: 2, kind: input, shape index: {}]   ;;  %s1380_s3 = inlined_call_operand.vmem [shape: bf16[128,64], index: 3, kind: input, shape index: {}]   ;;  %s1381_s4 = inlined_call_operand.vmem [shape: f32[1,64], index: 4, kind: input, shape index: {}]   ;;  %s1382_s5 = inlined_call_operand.vmem [shape: bf16[64,32], index: 5, kind: input, shape index: {}]   ;;  %s1383_s6 = inlined_call_operand.vmem [shape: f32[1,32], index: 6, kind: input, shape index: {}]   ;;  %s1384_s7 = inlined_call_operand.vmem [shape: bf16[32,2], index: 7, kind: input, shape index: {}]   ;;  %s1385_s8 = inlined_call_operand.vmem [shape: f32[1,2], index: 8, kind: input, shape index: {}]   ;;  %s1386_s9 = inlined_call_operand.hbm [shape: f32[2,2,16], index: 9, kind: output, shape index: {}]  }
   0x1   :  { %16 = vsyncpa [#allocation3 + $0x1], 0  ;;  %s1188_s30 = smov 0   ;;  %s1190_s10 = smov 0  }
   0x2   :  { %s1192_s11 = smov 0   ;;  %s1194_s12 = smov 0  }
   0x3   :  { %s1196_s13 = smov 0   ;;  %s1198_s14 = smov 0  }
   0x4 LB: > { %s880_s15 = sadd.s32 4294967295, %s1133_s14   ;;  %s881_s16 = sadd.s32 4294967294, %s1133_s14   ;;  %s1133_s14 = sphi %s1198_s14, %s22_s14   ;;  %s1129_s13 = sphi %s1196_s13, %s1396_s13   ;;  %s1125_s12 = sphi %s1194_s12, %s1395_s12   ;;  %s1121_s11 = sphi %s1192_s11, %s1394_s11   ;;  %s1117_s10 = sphi %s1190_s10, %s1393_s10   ;;  %s1113_s30 = sphi %s1188_s30, %s1392_s30  }
   0x5   : > { %s34_s17 = sadd.s32 1, %s1129_s13  ;;  %s249_s18 = sadd.s32 1, %s1121_s11 }
   0x6   : > { %p36_p0 = scmp.ge.s32.totalorder %s34_s17, 2  ;;  %p259_p1 = scmp.ne.s32.totalorder %s1121_s11, %s1117_s10 }
   0x7   : > { %p260_p2 = scmp.eq.s32.totalorder %s880_s15, 1  ;;  %p265_p3 = scmp.ne.s32.totalorder %s1117_s10, %s1113_s30 }
   0x8   : > { %s1398_s17 = smov (%p36_p0, %s34_s17), 0  ;;  %p266_p5 = scmp.eq.s32.totalorder %s881_s16, 1 }
   0x9   : > { %1388 = sst [smem:[#allocation5_spill]] %s1398_s17  ;;  %p1228_p4 = por %p260_p2, %p259_p1 }
   0xa   : > { %s244_s20 = ssub.s32 %s1129_s13, %s1398_s17  ;;  %p884_p6 = scmp.ge.s32.totalorder %s1133_s14, 1 }
   0xb   : > { %p247_p7 = scmp.eq.s32.totalorder %s244_s20, 0  ;;  %p1235_p8 = por %p266_p5, %p265_p3 }
   0xc   : > { %p329_p9 = scmp.lt.s32.totalorder %s1133_s14, 3 }
   0xd   : > { %s1241_s22 = scalar_select %p247_p7, %s1121_s11, %s249_s18  }
   0xe   : > { %p330_p10 = pnand %p884_p6, %p329_p9 }
   0xf   : > { %p378_p11 = scmp.lt.s32.totalorder (!%p330_p10), %s1125_s12, 1  ;;  %s374_s18 = sand.u32 (!%p330_p10), 1, %s1117_s10  }
  0x10   : > { %333 = sbr.rel (%p330_p10) target bundleno = 971 (0x3cb), region = 56  ;;  %s885_s20 = sshll.u32 (!%p330_p10), %s374_s18, 1 }
  0x11   : > { %s376_s24 = scalar_lea.vmem (!%p330_p10), [#allocation2], %s885_s20  ;;  %s771_s29 = scalar_lea.sflag (!%p330_p10), [#allocation3], %s374_s18 }
  0x12   : > { %s785_s26 = sshll.u32 (!%p330_p10), %s376_s24, 4  ;;  %s786_s26 = int_to_ptr.vmem [resolvable:$true] %s785_s26 }
  0x13   : > { %s1057_s15 = scalar_lea.vmem (!%p330_p10), %s786_s26, 32 }
  0x14   : > { %p1058_p12 = scmp.ne.s32.totalorder (!%p330_p10), %s786_s26, %s1057_s15 }
  0x15   : > { %v1135_v0 = vmov 0.0   ;;  %vm1136_vm0 = vmmov 0   ;;  %v1043_v1 = vld [vmem:[%s1380_s3 + $0x38] sm:$0xff]   ;;  %s1251_s25 = scalar_select %p378_p11, %s1125_s12, 1  ;;  %v1044_v2 = vld [vmem:[%s1380_s3 + $0x30] sm:$0xff]   ;;  %v1045_v3 = vld [vmem:[%s1380_s3 + $0x28] sm:$0xff]  }
  0x16   : > { %938 = vmatprep.subr.bf16.mxu0 %v1135_v0  ;;  %940 = vmatprep.mubr.msk.bf16.mxu0 %vm1136_vm0, %v1135_v0  ;;  %vm418_vm1 = vcmask 130048   ;;  %v1046_v6 = vld [vmem:[%s1380_s3 + $0x20] sm:$0xff]   ;;  %v1047_v7 = vld [vmem:[%s1380_s3 + $0x18] sm:$0xff]   ;;  %v1048_v8 = vld [vmem:[%s1380_s3 + $0x10] sm:$0xff]   ;;  %vm620_vm2 = vcmask 523264   ;;  %vm691_vm3 = vcmask 261120   ;;  %p1059_p13 = pnand %p1058_p12, %p1228_p4 }
  0x17   : > { %944 = vmatprep.subr.bf16.mxu1 %v1135_v0  ;;  %960 = vmatprep.mubr.msk.bf16.mxu1 %vm1136_vm0, %v1135_v0  ;;  %s917_s28 = sshll.u32 %s1251_s25, 3  ;;  %v1049_v9 = vld [vmem:[%s1380_s3 + $0x8] sm:$0xff]   ;;  %v1050_v10 = vld [vmem:[%s1380_s3] sm:$0xff]   ;;  %v1051_v11 = vld [vmem:[%s1382_s5 + $0x18] sm:$0xff]   ;;  %vm768_vm4 = vcmask 123904  }
  0x18   : > { %945 = vmatpush3.bf16.msra.mxu1 %v1043_v1  ;;  %s385_s16 = scalar_lea.vmem %s1377_s0, %s917_s28  ;;  %s391_s23 = scalar_lea.vmem %s1378_s1, %s917_s28  ;;  %v1052_v22 = vld [vmem:[%s1382_s5 + $0x10] sm:$0xff]   ;;  %v1053_v23 = vld [vmem:[%s1382_s5 + $0x8] sm:$0xff]   ;;  %v1054_v24 = vld [vmem:[%s1382_s5] sm:$0xff]  }
  0x19   : > { %946 = vmatprep.subr.bf16.mxu1 %v1135_v0  ;;  %v1041_v4 = vld [vmem:[%s391_s23] sm:$0xff]   ;;  %s394_s28 = scalar_lea.vmem %s1379_s2, %s1251_s25  ;;  %v1055_v35 = vld [vmem:[%s1384_s7 + $0x8] sm:$0xff]   ;;  %s914_s23 = sshll.u32 %s1125_s12, 5 }
  0x1a   : > { %v1042_v5 = vld [vmem:[%s385_s16] sm:$0xff]   ;;  %939 = vmatpush3.bf16.msra.mxu0 %v1041_v4  ;;  %p1060_p0 = pneg %p1059_p13  ;;  %s1137_s16 = smov [#allocation2]  }
  0x1b   : > { %964 = vmatprep.subr.bf16.mxu0 %v1135_v0  ;;  %v890_v12 = vld [vmem:[%s394_s28] ss:$0 sm:$0xff]  ;;  %s1337_s28 = scalar_lea.hbm %s1386_s9, %s914_s23  ;;  %s1061_s25 = sshll.u32 %s1137_s16, 4  ;;  %s1062_s25 = int_to_ptr.vmem [resolvable:$false] %s1061_s25 }
  0x1c   : > { %947 = vmatpush3.bf16.msra.mxu1 %v1044_v2  ;;  %v894_v25 = vld [vmem:[%s1381_s4] ss:$0 sm:$0xff]  ;;  %s1063_s12 = scalar_lea.vmem %s1062_s25, 64  ;;  %p1064_p1 = scmp.lt.s32.totalorder %s786_s26, %s1062_s25 }
  0x1d   : > { %948 = vmatprep.subr.bf16.mxu1 %v1135_v0  ;;  %941 = vmatmul.mubr.msk.bf16.vlgmr.msra.gmra.mxu0 %vm418_vm1, %v1042_v5  ;;  %v1056_v36 = vld [vmem:[%s1384_s7] sm:$0xff]   ;;  %p1065_p2 = scmp.lt.s32.totalorder %s1063_s12, %s1057_s15 }
  0x1e   : > { %972 = vmatprep.mubr.msk.bf16.mxu0 %vm1136_vm0, %v1135_v0  ;;  %965 = vmatpush3.bf16.msra.mxu0 %v1051_v11  ;;  %v903_v37 = vld [vmem:[%s1383_s6] ss:$0 sm:$0xff] }
  0x1f   : > { %966 = vmatprep.subr.bf16.mxu0 %v1135_v0  ;;  %v909_v47 = vld [vmem:[%s1385_s8] ss:$0 sm:$0xff]  ;;  %p1066_p3 = por %p1065_p2, %p1064_p1 }
  0x20   : > { %949 = vmatpush3.bf16.msra.mxu1 %v1045_v3 }
  0x21   : > { %950 = vmatprep.subr.bf16.mxu1 %v1135_v0  ;;  %p1067_p5 = pnand %p1066_p3, %p1060_p0 }
  0x22   : > { %967 = vmatpush3.bf16.msra.mxu0 %v1052_v22 }
  0x23   : > { %968 = vmatprep.subr.bf16.mxu0 %v1135_v0 }
  0x24   : > { %951 = vmatpush3.bf16.msra.mxu1 %v1046_v6 }
  0x25   : > { %952 = vmatprep.subr.bf16.mxu1 %v1135_v0 }
  0x26   : > { %969 = vmatpush3.bf16.msra.mxu0 %v1053_v23 }
  0x27   : > { %970 = vmatprep.subr.bf16.mxu0 %v1135_v0 }
  0x28   : > { %953 = vmatpush3.bf16.msra.mxu1 %v1047_v7 }
  0x29   : > { %954 = vmatprep.subr.bf16.mxu1 %v1135_v0 }
  0x2a   : > { %971 = vmatpush3.bf16.msra.mxu0 %v1054_v24 }
  0x2b   : > { %976 = vmatprep.subr.bf16.mxu0 %v1135_v0 }
  0x2c   : > { %955 = vmatpush3.bf16.msra.mxu1 %v1048_v8 }
  0x2d   : > { %956 = vmatprep.subr.bf16.mxu1 %v1135_v0 }
  0x30   : > { %957 = vmatpush3.bf16.msra.mxu1 %v1049_v9 }
  0x31   : > { %958 = vmatprep.subr.bf16.mxu1 %v1135_v0 }
  0x34   : > { %959 = vmatpush3.bf16.msra.mxu1 %v1050_v10 }
  0xdd   : > { %v456_v13 = vpop.f32.mrf.mxu0 }
  0xde   : > { %v457_v15 = vadd.f32 %v890_v12, %v456_v13 }
  0xdf   : > { %v942_v14 = vpop.f32.mrf.mxu0 }
  0xe0   : > { %v463_v19 = vmax.f32 %v457_v15, 0.0 }
  0xe1   : > { %v459_v16 = vpop.f32.mrf.mxu0 }
  0xe2   : > { %v460_v17 = vadd.f32 %v890_v12, %v459_v16 }
  0xe3   : > { %v943_v18 = vpop.f32.mrf.mxu0 }
  0xe4   : > { %v464_v20 = vmax.f32 %v460_v17, 0.0 }
  0xe6   : > { %v465_v21 = vpack.c.bf16 %v464_v20, %v463_v19 }
  0xe8   : > { %961 = vmatmul.mubr.bf16.vlgmr.msra.gmra.mxu1 %v465_v21 }
 0x1a8   : > { %v571_v26 = vpop.f32.mrf.mxu1 }
 0x1a9   : > { %v572_v28 = vadd.f32 %v894_v25, %v571_v26 }
 0x1aa   : > { %v962_v27 = vpop.f32.mrf.mxu1 }
 0x1ab   : > { %v578_v32 = vmax.f32 %v572_v28, 0.0 }
 0x1ac   : > { %v574_v29 = vpop.f32.mrf.mxu1 }
 0x1ad   : > { %v575_v30 = vadd.f32 %v894_v25, %v574_v29 }
 0x1ae   : > { %v963_v31 = vpop.f32.mrf.mxu1 }
 0x1af   : > { %v579_v33 = vmax.f32 %v575_v30, 0.0 }
 0x1b1   : > { %v580_v34 = vpack.c.bf16 %v579_v33, %v578_v32 }
 0x1b3   : > { %973 = vmatmul.mubr.msk.bf16.vlgmr.msra.gmra.mxu0 %vm620_vm2, %v580_v34 }
 0x1b4   : > { %980 = vmatprep.mubr.msk.bf16.mxu0 %vm1136_vm0, %v1135_v0  ;;  %977 = vmatpush3.bf16.msra.mxu0 %v1055_v35 }
 0x1b5   : > { %978 = vmatprep.subr.bf16.mxu0 %v1135_v0 }
 0x1b8   : > { %979 = vmatpush3.bf16.msra.mxu0 %v1056_v36 }
 0x273   : > { %v658_v38 = vpop.f32.mrf.mxu0 }
 0x274   : > { %v659_v40 = vadd.f32 %v903_v37, %v658_v38 }
 0x275   : > { %v974_v39 = vpop.f32.mrf.mxu0 }
 0x276   : > { %v665_v44 = vmax.f32 %v659_v40, 0.0 }
 0x277   : > { %v661_v41 = vpop.f32.mrf.mxu0 }
 0x278   : > { %v662_v42 = vadd.f32 %v903_v37, %v661_v41 }
 0x279   : > { %v975_v43 = vpop.f32.mrf.mxu0 }
 0x27a   : > { %v666_v45 = vmax.f32 %v662_v42, 0.0 }
 0x27c   : > { %v667_v46 = vpack.c.bf16 %v666_v45, %v665_v44 }
 0x27e   : > { %981 = vmatmul.mubr.msk.bf16.vlgmr.msra.gmra.mxu0 %vm691_vm3, %v667_v46 }
 0x33e   : > { %v729_v48 = vpop.f32.mrf.mxu0 }
 0x33f   : > { %v730_v49 = vadd.f32 %v909_v47, %v729_v48 }
 0x340   : > { %v982_v50 = vpop.f32.mrf.mxu0 }
 0x341   : > { %736 = vxpose.xlu0.b32.start [1/2] (short) (narrow) %v730_v49, 8 }
 0x342   : > { %v732_v51 = vpop.f32.mrf.mxu0 }
 0x343   : > { %v733_v52 = vadd.f32 %v909_v47, %v732_v51 }
 0x344   : > { %v983_v53 = vpop.f32.mrf.mxu0 }
 0x345   : > { %737 = vxpose.xlu0.b32.end [2/2] (short) (narrow) %v733_v52, 8 }
 0x3bd   : > { %v752_v54 = vpop.trf.xlu0 }
 0x3be   : > { %769 = vst.msk [vmem:[%s376_s24] sm:$0x3] %vm768_vm4, %v752_v54 }
 0x3bf   : > { %1070 = shalt.err (!%p1067_p5)
}
 0x3c0   : > { %s1071_s20 = scalar_lea.hbm %s1337_s28, 32  ;;  %s1075_s24 = scalar_lea.hbm %s1386_s9, 64 }
 0x3c1   : > { %p1072_p6 = scmp.ne.s32.totalorder %s1337_s28, %s1071_s20  ;;  %p1076_p10 = scmp.lt.s32.totalorder %s1337_s28, %s1386_s9 }
 0x3c2   : > { %p1077_p11 = scmp.lt.s32.totalorder %s1075_s24, %s1071_s20 }
 0x3c3   : > { %p1073_p7 = pnand %p1072_p6, %p1228_p4 }
 0x3c4   : > { %p1078_p12 = por %p1077_p11, %p1076_p10 }
 0x3c5   : > { %p1074_p9 = pneg %p1073_p7 }
 0x3c7   : > { %p1079_p13 = pnand %p1078_p12, %p1074_p9 }
 0x3c9   : > { %1082 = shalt.err (!%p1079_p13)
}
 0x3ca   : > { %984 = dma.vmem_to_hbm [thread:$0]  (%p1228_p4), %s786_s26, 32, %s1337_s28, %s771_s29  }
 0x3cb PF: > { %p990_p0 = scmp.ge.s32.totalorder %s1133_s14, 2  ;;  %s797_s15 = sand.u32 1, %s1113_s30  }
 0x3cc   : > { %s798_s16 = scalar_lea.sflag [#allocation3], %s797_s15 }
 0x3cd   : > { %p987_p1 = pnand %p990_p0, %p1235_p8 }
 0x3cf   : > { %p988_p2 = pneg %p987_p1 }
 0x3d1   : > { %1108 = dma.done.wait (%p988_p2), %s798_s16, 32  }
 0x3d2   : > { %1110 = vsyncadd (%p988_p2), %s798_s16, 4294967264  ;;  %s22_s14 = sadd.s32 1, %s1133_s14   ;;  %s1391_s19 = sld [smem:[#allocation5_spill]] }
 0x3d3   : > { %p19_p3 = scmp.ge.s32.totalorder %s22_s14, 4   ;;  %s1392_s30 = smov %s1117_s10 }
 0x3d4   : > { %s1393_s10 = smov %s1121_s11  ;;  %s1394_s11 = smov %s1241_s22 }
 0x3d5   : > { %s1395_s12 = smov %s1129_s13  ;;  %21 = sbr.rel (!%p19_p3) target bundleno = 4 (0x4), region = 97 }
 0x3d8   : > { %s1396_s13 = smov %s1391_s19 }
 0x3da   :  { %803 = vsyncpa [#allocation3], 1 }
 0x3db   :  { %805 = vsyncpa [#allocation3 + $0x1], 1 }

</bundles_post_ra>
